<compile_context>
chip_gen: v6e
topology: v6e:2x2x1
jax: 0.10.0
libtpu: 0.0.40
codegen_flags: <defaults>
</compile_context>

<pallas_src>
import numpy as np

import jax
import jax.numpy as jnp
from jax.experimental import pallas as pl
from jax.experimental.pallas import tpu as pltpu


# --------------------------- fused Pallas kernel -----------------------------

def net_fused_kernel(x_ref, a1_ref, b1_ref, a2e_ref, a2o_ref, b2_ref,
                     bfc1_ref, fb1_ref, wfc2_ref, fb2_ref,
                     o_ref, y1_sc, wm_sc):
    """Whole-network forward for a small batch, fully VMEM-resident.

    x_ref   : (N, H, Cin*W)        input, lane = ci*W + iw
    a1_ref  : (3, Cin*W, F1*OW1)   conv1 band matrices (one per kernel row)
    b1_ref  : (1, F1*OW1)          conv1 bias, repeated per output column
    a2e_ref : (3, F1*OW1, F2*PW)   conv2 band matrices, even output columns
    a2o_ref : (3, F1*OW1, F2*PW)   conv2 band matrices, odd output columns
    b2_ref  : (1, F2*PW)           conv2 bias, repeated per pooled column
    bfc1_ref: (PH, F2*PW, HIDDEN)  fc1 weight with flatten + pooling layout folded in
    fb1_ref : (1, HIDDEN)          fc1 bias
    wfc2_ref: (HIDDEN, 10)         fc2 weight
    fb2_ref : (1, 10)              fc2 bias
    o_ref   : (N, 10)              log-probabilities
    y1_sc   : VMEM (OH1, F1*OW1)   conv1 activation scratch (reused per image)
    wm_sc   : VMEM (OH2, F2*PW)    width-pooled conv2 activation scratch
    """
    n_batch = x_ref.shape[0]
    kh = a1_ref.shape[0]
    oh1, l1 = y1_sc.shape          # 14, 112
    oh2, l2 = wm_sc.shape          # 12, 48
    n_pool = oh2 // 2              # 6

    # Loop-invariant loads / broadcasts hoisted out of the batch loop.
    bias1 = jnp.broadcast_to(b1_ref[...], (oh1, l1))
    bias2 = jnp.broadcast_to(b2_ref[...], (oh2, l2))
    fb1 = fb1_ref[...]
    wfc2 = wfc2_ref[...]
    fb2 = fb2_ref[...]

    hidden_rows = []
    for n in range(n_batch):                         # static unroll (N is tiny)
        # ---- conv1: banded matmuls, register accumulation, single store ----
        acc1 = bias1
        for dh in range(kh):
            acc1 = acc1 + jnp.dot(x_ref[n, dh:dh + oh1, :], a1_ref[dh],
                                  preferred_element_type=jnp.float32)
        y1_sc[...] = acc1

        # ---- conv2 (even / odd output columns) ----
        acc_e = bias2
        acc_o = bias2
        for dh in range(kh):
            slab = y1_sc[dh:dh + oh2, :]
            acc_e = acc_e + jnp.dot(slab, a2e_ref[dh],
                                    preferred_element_type=jnp.float32)
            acc_o = acc_o + jnp.dot(slab, a2o_ref[dh],
                                    preferred_element_type=jnp.float32)
        # horizontal half of the 2x2 max-pool: elementwise max of even/odd cols
        wm_sc[...] = jnp.maximum(acc_e, acc_o)

        # ---- vertical half of the pool + ReLU + flatten + fc1 ----
        # TODO(synk): Dropout(drop1)/Dropout(drop2) are identity (eval mode).
        hidden = fb1                                  # (1, HIDDEN)
        for oh in range(n_pool):
            ra = wm_sc[2 * oh:2 * oh + 1, :]          # (1, F2*PW)
            rb = wm_sc[2 * oh + 1:2 * oh + 2, :]
            feat = jnp.maximum(jnp.maximum(ra, rb), 0.0)   # maxpool + relu
            hidden = hidden + jnp.dot(feat, bfc1_ref[oh],
                                      preferred_element_type=jnp.float32)
        hidden_rows.append(hidden)

    # ---- fc2 + log_softmax for the whole batch, single output store ----
    hid = jnp.concatenate(hidden_rows, axis=0)        # (N, HIDDEN)
    z = jnp.dot(hid, wfc2, preferred_element_type=jnp.float32) + fb2
    m = jnp.max(z, axis=-1, keepdims=True)
    lse = jnp.log(jnp.sum(jnp.exp(z - m), axis=-1, keepdims=True)) + m
    o_ref[...] = (z - lse).astype(o_ref.dtype)


# --------------------------- host-side weight packing ------------------------

def _band(w_hwio, w_in, n_cols, stride, offset):
    """Band matrix A[dh] with A[dh][ci*w_in + iw, co*n_cols + j] = w[dh, dw, ci, co]
    where iw = j*stride + offset + dw (VALID conv along the lane-packed width)."""
    kh, kw, cin, cout = w_hwio.shape
    a = np.zeros((kh, cin * w_in, cout * n_cols), np.float32)
    for dh in range(kh):
        for dw in range(kw):
            for j in range(n_cols):
                iw = j * stride + offset + dw
                rows = np.arange(cin) * w_in + iw
                cols = np.arange(cout) * n_cols + j
                a[dh, rows[:, None], cols[None, :]] = w_hwio[dh, dw]
    return a


def prepare_params(p, in_hw):
    """One-time host packing of the PyTorch-layout weights into kernel layout."""
    H, W = in_hw
    w1 = np.asarray(p["w_conv1"], np.float32)     # (3, 3, Cin, F1), HWIO
    w2 = np.asarray(p["w_conv2"], np.float32)     # (3, 3, F1, F2), HWIO
    f2 = w2.shape[-1]
    ow1 = W - 2
    ow2, oh2 = ow1 - 2, (H - 2) - 2
    pw, ph = ow2 // 2, oh2 // 2                   # pooled spatial dims (6, 6)

    a1 = _band(w1, W, ow1, stride=1, offset=0)             # (3, Cin*W, F1*OW1)
    a2e = _band(w2, ow1, pw, stride=2, offset=0)            # (3, F1*OW1, F2*PW)
    a2o = _band(w2, ow1, pw, stride=2, offset=1)
    b1l = np.repeat(np.asarray(p["b_conv1"], np.float32).reshape(-1), ow1)[None, :]
    b2l = np.repeat(np.asarray(p["b_conv2"], np.float32).reshape(-1), pw)[None, :]

    # Fold nn.Flatten's NCHW (C, H, W) ordering + the pooled lane layout
    # (lane = co*PW + ow') into the fc1 weight: one (F2*PW, HIDDEN) slab per
    # pooled row.
    wfc1 = np.asarray(p["w_fc1"], np.float32)     # (F2*PH*PW, HIDDEN)
    hidden = wfc1.shape[-1]
    bfc1 = np.zeros((ph, f2 * pw, hidden), np.float32)
    for oh in range(ph):
        for co in range(f2):
            for ow in range(pw):
                bfc1[oh, co * pw + ow, :] = wfc1[co * (ph * pw) + oh * pw + ow, :]

    return {
        "a1": jnp.asarray(a1), "b1l": jnp.asarray(b1l),
        "a2e": jnp.asarray(a2e), "a2o": jnp.asarray(a2o), "b2l": jnp.asarray(b2l),
        "bfc1": jnp.asarray(bfc1),
        "fb1": jnp.asarray(np.asarray(p["b_fc1"], np.float32).reshape(1, -1)),
        "wfc2": jnp.asarray(np.asarray(p["w_fc2"], np.float32)),
        "fb2": jnp.asarray(np.asarray(p["b_fc2"], np.float32).reshape(1, -1)),
    }


# --------------------------- wrapper ------------------------------------------

def net_forward(x_nchw, kp):
    n, c, h, w = x_nchw.shape
    oh1, oh2 = h - 2, h - 4
    l1 = kp["a1"].shape[-1]
    l2 = kp["a2e"].shape[-1]
    n_class = kp["fb2"].shape[-1]
    # Boundary layout only: NCHW -> (N, H, Cin*W) with lane = ci*W + iw.
    xk = jnp.transpose(x_nchw, (0, 2, 1, 3)).reshape(n, h, c * w)
    return pl.pallas_call(
        net_fused_kernel,
        out_shape=jax.ShapeDtypeStruct((n, n_class), jnp.float32),
        in_specs=[pl.BlockSpec(memory_space=pltpu.MemorySpace.VMEM)] * 10,
        out_specs=pl.BlockSpec(memory_space=pltpu.MemorySpace.VMEM),
        scratch_shapes=[
            pltpu.VMEM((oh1, l1), jnp.float32),
            pltpu.VMEM((oh2, l2), jnp.float32),
        ],
    )(xk, kp["a1"], kp["b1l"], kp["a2e"], kp["a2o"], kp["b2l"],
      kp["bfc1"], kp["fb1"], kp["wfc2"], kp["fb2"])


# --------------------------- pure-JAX reference --------------------------------

def reference_forward(x_nchw, p):
    x = jnp.transpose(x_nchw, (0, 2, 3, 1))
    dn = ("NHWC", "HWIO", "NHWC")
    y = jax.lax.conv_general_dilated(x, p["w_conv1"], (1, 1), "VALID",
                                     dimension_numbers=dn) + p["b_conv1"]
    y = jax.lax.conv_general_dilated(y, p["w_conv2"], (1, 1), "VALID",
                                     dimension_numbers=dn) + p["b_conv2"]
    n, h, w, c = y.shape
    y = y.reshape(n, h // 2, 2, w // 2, 2, c).max(axis=(2, 4))
    y = jnp.maximum(y, 0.0)
    y = jnp.transpose(y, (0, 3, 1, 2)).reshape(n, -1)    # nn.Flatten on NCHW
    hid = y @ p["w_fc1"] + p["b_fc1"]
    z = hid @ p["w_fc2"] + p["b_fc2"]
    return jax.nn.log_softmax(z, axis=1)


# --------------------------- main ----------------------------------------------

if __name__ == "__main__":
    N, CIN, S = 2, 4, 16            # input NCHW
    F1, F2, HIDDEN, NCLASS = 8, 8, 32, 10
    FLAT = F2 * 6 * 6               # after two VALID 3x3 convs + 2x2 maxpool

    key = jax.random.PRNGKey(0)
    ks = jax.random.split(key, 9)
    params = {
        "w_conv1": 0.1 * jax.random.normal(ks[0], (3, 3, CIN, F1), jnp.float32),
        "b_conv1": 0.1 * jax.random.normal(ks[1], (1, F1), jnp.float32),
        "w_conv2": 0.1 * jax.random.normal(ks[2], (3, 3, F1, F2), jnp.float32),
        "b_conv2": 0.1 * jax.random.normal(ks[3], (1, F2), jnp.float32),
        "w_fc1":   0.05 * jax.random.normal(ks[4], (FLAT, HIDDEN), jnp.float32),
        "b_fc1":   0.05 * jax.random.normal(ks[5], (1, HIDDEN), jnp.float32),
        "w_fc2":   0.05 * jax.random.normal(ks[6], (HIDDEN, NCLASS), jnp.float32),
        "b_fc2":   0.05 * jax.random.normal(ks[7], (1, NCLASS), jnp.float32),
    }
    x = jax.random.normal(ks[8], (N, CIN, S, S), jnp.float32)

    kparams = prepare_params(params, (S, S))   # one-time host-side packing

    out = jax.jit(net_forward)(x, kparams)
    out = jax.block_until_ready(out)

    ref = reference_forward(x, params)
    assert out.shape == (N, NCLASS), out.shape
    assert jnp.allclose(out, ref, atol=1e-4, rtol=1e-4), \
        f"max abs diff {jnp.max(jnp.abs(out - ref))}"
    # log-probabilities should normalize
    assert jnp.allclose(jnp.sum(jnp.exp(out), axis=1), 1.0, atol=1e-4)

    print("KERNEL_OK")
</pallas_src>

<mosaic_0001>
module attributes {stable_mosaic.version = 11 : i64} {
  func.func @net_fused_kernel(%arg0: memref<2x16x64xf32, #tpu.memory_space<vmem>>, %arg1: memref<3x64x112xf32, #tpu.memory_space<vmem>>, %arg2: memref<1x112xf32, #tpu.memory_space<vmem>>, %arg3: memref<3x112x48xf32, #tpu.memory_space<vmem>>, %arg4: memref<3x112x48xf32, #tpu.memory_space<vmem>>, %arg5: memref<1x48xf32, #tpu.memory_space<vmem>>, %arg6: memref<6x48x32xf32, #tpu.memory_space<vmem>>, %arg7: memref<1x32xf32, #tpu.memory_space<vmem>>, %arg8: memref<32x10xf32, #tpu.memory_space<vmem>>, %arg9: memref<1x10xf32, #tpu.memory_space<vmem>>, %arg10: memref<2x10xf32, #tpu.memory_space<vmem>>, %arg11: memref<14x112xf32, #tpu.memory_space<vmem>>, %arg12: memref<12x48xf32, #tpu.memory_space<vmem>>) attributes {dimension_semantics = [], scalar_prefetch = 0 : i64, scratch_operands = 2 : i64, tpu.core_type = #tpu.core_type<tc>} {
    %c0 = arith.constant 0 : index
    %c0_0 = arith.constant 0 : index
    %0 = vector.load %arg2[%c0, %c0_0] : memref<1x112xf32, #tpu.memory_space<vmem>>, vector<1x112xf32>
    %1 = vector.shape_cast %0 : vector<1x112xf32> to vector<1x112xf32>
    %2 = vector.broadcast %1 : vector<1x112xf32> to vector<14x112xf32>
    %c0_1 = arith.constant 0 : index
    %c0_2 = arith.constant 0 : index
    %3 = vector.load %arg5[%c0_1, %c0_2] : memref<1x48xf32, #tpu.memory_space<vmem>>, vector<1x48xf32>
    %4 = vector.shape_cast %3 : vector<1x48xf32> to vector<1x48xf32>
    %5 = vector.broadcast %4 : vector<1x48xf32> to vector<12x48xf32>
    %c0_3 = arith.constant 0 : index
    %c0_4 = arith.constant 0 : index
    %6 = vector.load %arg7[%c0_3, %c0_4] : memref<1x32xf32, #tpu.memory_space<vmem>>, vector<1x32xf32>
    %c0_5 = arith.constant 0 : index
    %c0_6 = arith.constant 0 : index
    %7 = vector.load %arg8[%c0_5, %c0_6] : memref<32x10xf32, #tpu.memory_space<vmem>>, vector<32x10xf32>
    %c0_7 = arith.constant 0 : index
    %c0_8 = arith.constant 0 : index
    %8 = vector.load %arg9[%c0_7, %c0_8] : memref<1x10xf32, #tpu.memory_space<vmem>>, vector<1x10xf32>
    %c0_9 = arith.constant 0 : index
    %c0_10 = arith.constant 0 : index
    %c0_11 = arith.constant 0 : index
    %9 = vector.load %arg0[%c0_9, %c0_10, %c0_11] : memref<2x16x64xf32, #tpu.memory_space<vmem>>, vector<1x14x64xf32>
    %10 = vector.shape_cast %9 : vector<1x14x64xf32> to vector<14x64xf32>
    %c0_12 = arith.constant 0 : index
    %c0_13 = arith.constant 0 : index
    %c0_14 = arith.constant 0 : index
    %11 = vector.load %arg1[%c0_12, %c0_13, %c0_14] : memref<3x64x112xf32, #tpu.memory_space<vmem>>, vector<1x64x112xf32>
    %12 = vector.shape_cast %11 : vector<1x64x112xf32> to vector<64x112xf32>
    %cst = arith.constant dense<0.000000e+00> : vector<14x112xf32>
    %13 = tpu.matmul %10, %12, %cst {dimension_numbers = #tpu.dot_dimension_numbers<[1], [0], [0], [1], [0, 0, 1, 1], [], []>} : vector<14x64xf32>, vector<64x112xf32>, vector<14x112xf32> -> vector<14x112xf32>
    %14 = arith.addf %2, %13 : vector<14x112xf32>
    %c0_15 = arith.constant 0 : index
    %c1 = arith.constant 1 : index
    %c0_16 = arith.constant 0 : index
    %15 = vector.load %arg0[%c0_15, %c1, %c0_16] : memref<2x16x64xf32, #tpu.memory_space<vmem>>, vector<1x14x64xf32>
    %16 = vector.shape_cast %15 : vector<1x14x64xf32> to vector<14x64xf32>
    %c1_17 = arith.constant 1 : index
    %c0_18 = arith.constant 0 : index
    %c0_19 = arith.constant 0 : index
    %17 = vector.load %arg1[%c1_17, %c0_18, %c0_19] : memref<3x64x112xf32, #tpu.memory_space<vmem>>, vector<1x64x112xf32>
    %18 = vector.shape_cast %17 : vector<1x64x112xf32> to vector<64x112xf32>
    %cst_20 = arith.constant dense<0.000000e+00> : vector<14x112xf32>
    %19 = tpu.matmul %16, %18, %cst_20 {dimension_numbers = #tpu.dot_dimension_numbers<[1], [0], [0], [1], [0, 0, 1, 1], [], []>} : vector<14x64xf32>, vector<64x112xf32>, vector<14x112xf32> -> vector<14x112xf32>
    %20 = arith.addf %14, %19 : vector<14x112xf32>
    %c0_21 = arith.constant 0 : index
    %c2 = arith.constant 2 : index
    %c0_22 = arith.constant 0 : index
    %21 = vector.load %arg0[%c0_21, %c2, %c0_22] : memref<2x16x64xf32, #tpu.memory_space<vmem>>, vector<1x14x64xf32>
    %22 = vector.shape_cast %21 : vector<1x14x64xf32> to vector<14x64xf32>
    %c2_23 = arith.constant 2 : index
    %c0_24 = arith.constant 0 : index
    %c0_25 = arith.constant 0 : index
    %23 = vector.load %arg1[%c2_23, %c0_24, %c0_25] : memref<3x64x112xf32, #tpu.memory_space<vmem>>, vector<1x64x112xf32>
    %24 = vector.shape_cast %23 : vector<1x64x112xf32> to vector<64x112xf32>
    %cst_26 = arith.constant dense<0.000000e+00> : vector<14x112xf32>
    %25 = tpu.matmul %22, %24, %cst_26 {dimension_numbers = #tpu.dot_dimension_numbers<[1], [0], [0], [1], [0, 0, 1, 1], [], []>} : vector<14x64xf32>, vector<64x112xf32>, vector<14x112xf32> -> vector<14x112xf32>
    %26 = arith.addf %20, %25 : vector<14x112xf32>
    %c0_27 = arith.constant 0 : index
    %c0_28 = arith.constant 0 : index
    %27 = vector.load %arg11[%c0_27, %c0_28] : memref<14x112xf32, #tpu.memory_space<vmem>>, vector<14x112xf32>
    tpu.vector_store %arg11[%c0_27, %c0_28], %26 {strides = array<i32>} : memref<14x112xf32, #tpu.memory_space<vmem>>, vector<14x112xf32>,
    %c0_29 = arith.constant 0 : index
    %c0_30 = arith.constant 0 : index
    %28 = vector.load %arg11[%c0_29, %c0_30] : memref<14x112xf32, #tpu.memory_space<vmem>>, vector<12x112xf32>
    %c0_31 = arith.constant 0 : index
    %c0_32 = arith.constant 0 : index
    %c0_33 = arith.constant 0 : index
    %29 = vector.load %arg3[%c0_31, %c0_32, %c0_33] : memref<3x112x48xf32, #tpu.memory_space<vmem>>, vector<1x112x48xf32>
    %30 = vector.shape_cast %29 : vector<1x112x48xf32> to vector<112x48xf32>
    %cst_34 = arith.constant dense<0.000000e+00> : vector<12x48xf32>
    %31 = tpu.matmul %28, %30, %cst_34 {dimension_numbers = #tpu.dot_dimension_numbers<[1], [0], [0], [1], [0, 0, 1, 1], [], []>} : vector<12x112xf32>, vector<112x48xf32>, vector<12x48xf32> -> vector<12x48xf32>
    %32 = arith.addf %5, %31 : vector<12x48xf32>
    %c0_35 = arith.constant 0 : index
    %c0_36 = arith.constant 0 : index
    %c0_37 = arith.constant 0 : index
    %33 = vector.load %arg4[%c0_35, %c0_36, %c0_37] : memref<3x112x48xf32, #tpu.memory_space<vmem>>, vector<1x112x48xf32>
    %34 = vector.shape_cast %33 : vector<1x112x48xf32> to vector<112x48xf32>
    %cst_38 = arith.constant dense<0.000000e+00> : vector<12x48xf32>
    %35 = tpu.matmul %28, %34, %cst_38 {dimension_numbers = #tpu.dot_dimension_numbers<[1], [0], [0], [1], [0, 0, 1, 1], [], []>} : vector<12x112xf32>, vector<112x48xf32>, vector<12x48xf32> -> vector<12x48xf32>
    %36 = arith.addf %5, %35 : vector<12x48xf32>
    %c1_39 = arith.constant 1 : index
    %c0_40 = arith.constant 0 : index
    %37 = vector.load %arg11[%c1_39, %c0_40] : memref<14x112xf32, #tpu.memory_space<vmem>>, vector<12x112xf32>
    %c1_41 = arith.constant 1 : index
    %c0_42 = arith.constant 0 : index
    %c0_43 = arith.constant 0 : index
    %38 = vector.load %arg3[%c1_41, %c0_42, %c0_43] : memref<3x112x48xf32, #tpu.memory_space<vmem>>, vector<1x112x48xf32>
    %39 = vector.shape_cast %38 : vector<1x112x48xf32> to vector<112x48xf32>
    %cst_44 = arith.constant dense<0.000000e+00> : vector<12x48xf32>
    %40 = tpu.matmul %37, %39, %cst_44 {dimension_numbers = #tpu.dot_dimension_numbers<[1], [0], [0], [1], [0, 0, 1, 1], [], []>} : vector<12x112xf32>, vector<112x48xf32>, vector<12x48xf32> -> vector<12x48xf32>
    %41 = arith.addf %32, %40 : vector<12x48xf32>
    %c1_45 = arith.constant 1 : index
    %c0_46 = arith.constant 0 : index
    %c0_47 = arith.constant 0 : index
    %42 = vector.load %arg4[%c1_45, %c0_46, %c0_47] : memref<3x112x48xf32, #tpu.memory_space<vmem>>, vector<1x112x48xf32>
    %43 = vector.shape_cast %42 : vector<1x112x48xf32> to vector<112x48xf32>
    %cst_48 = arith.constant dense<0.000000e+00> : vector<12x48xf32>
    %44 = tpu.matmul %37, %43, %cst_48 {dimension_numbers = #tpu.dot_dimension_numbers<[1], [0], [0], [1], [0, 0, 1, 1], [], []>} : vector<12x112xf32>, vector<112x48xf32>, vector<12x48xf32> -> vector<12x48xf32>
    %45 = arith.addf %36, %44 : vector<12x48xf32>
    %c2_49 = arith.constant 2 : index
    %c0_50 = arith.constant 0 : index
    %46 = vector.load %arg11[%c2_49, %c0_50] : memref<14x112xf32, #tpu.memory_space<vmem>>, vector<12x112xf32>
    %c2_51 = arith.constant 2 : index
    %c0_52 = arith.constant 0 : index
    %c0_53 = arith.constant 0 : index
    %47 = vector.load %arg3[%c2_51, %c0_52, %c0_53] : memref<3x112x48xf32, #tpu.memory_space<vmem>>, vector<1x112x48xf32>
    %48 = vector.shape_cast %47 : vector<1x112x48xf32> to vector<112x48xf32>
    %cst_54 = arith.constant dense<0.000000e+00> : vector<12x48xf32>
    %49 = tpu.matmul %46, %48, %cst_54 {dimension_numbers = #tpu.dot_dimension_numbers<[1], [0], [0], [1], [0, 0, 1, 1], [], []>} : vector<12x112xf32>, vector<112x48xf32>, vector<12x48xf32> -> vector<12x48xf32>
    %50 = arith.addf %41, %49 : vector<12x48xf32>
    %c2_55 = arith.constant 2 : index
    %c0_56 = arith.constant 0 : index
    %c0_57 = arith.constant 0 : index
    %51 = vector.load %arg4[%c2_55, %c0_56, %c0_57] : memref<3x112x48xf32, #tpu.memory_space<vmem>>, vector<1x112x48xf32>
    %52 = vector.shape_cast %51 : vector<1x112x48xf32> to vector<112x48xf32>
    %cst_58 = arith.constant dense<0.000000e+00> : vector<12x48xf32>
    %53 = tpu.matmul %46, %52, %cst_58 {dimension_numbers = #tpu.dot_dimension_numbers<[1], [0], [0], [1], [0, 0, 1, 1], [], []>} : vector<12x112xf32>, vector<112x48xf32>, vector<12x48xf32> -> vector<12x48xf32>
    %54 = arith.addf %45, %53 : vector<12x48xf32>
    %55 = arith.maximumf %50, %54 : vector<12x48xf32>
    %c0_59 = arith.constant 0 : index
    %c0_60 = arith.constant 0 : index
    %56 = vector.load %arg12[%c0_59, %c0_60] : memref<12x48xf32, #tpu.memory_space<vmem>>, vector<12x48xf32>
    tpu.vector_store %arg12[%c0_59, %c0_60], %55 {strides = array<i32>} : memref<12x48xf32, #tpu.memory_space<vmem>>, vector<12x48xf32>,
    %c0_61 = arith.constant 0 : index
    %c0_62 = arith.constant 0 : index
    %57 = vector.load %arg12[%c0_61, %c0_62] : memref<12x48xf32, #tpu.memory_space<vmem>>, vector<1x48xf32>
    %c1_63 = arith.constant 1 : index
    %c0_64 = arith.constant 0 : index
    %58 = vector.load %arg12[%c1_63, %c0_64] : memref<12x48xf32, #tpu.memory_space<vmem>>, vector<1x48xf32>
    %59 = arith.maximumf %57, %58 : vector<1x48xf32>
    %cst_65 = arith.constant 0.000000e+00 : f32
    %60 = vector.broadcast %cst_65 : f32 to vector<1x48xf32>
    %61 = arith.maximumf %59, %60 : vector<1x48xf32>
    %c0_66 = arith.constant 0 : index
    %c0_67 = arith.constant 0 : index
    %c0_68 = arith.constant 0 : index
    %62 = vector.load %arg6[%c0_66, %c0_67, %c0_68] : memref<6x48x32xf32, #tpu.memory_space<vmem>>, vector<1x48x32xf32>
    %63 = vector.shape_cast %62 : vector<1x48x32xf32> to vector<48x32xf32>
    %cst_69 = arith.constant dense<0.000000e+00> : vector<1x32xf32>
    %64 = tpu.matmul %61, %63, %cst_69 {dimension_numbers = #tpu.dot_dimension_numbers<[1], [0], [0], [1], [0, 0, 1, 1], [], []>} : vector<1x48xf32>, vector<48x32xf32>, vector<1x32xf32> -> vector<1x32xf32>
    %65 = arith.addf %6, %64 : vector<1x32xf32>
    %c2_70 = arith.constant 2 : index
    %c0_71 = arith.constant 0 : index
    %66 = vector.load %arg12[%c2_70, %c0_71] : memref<12x48xf32, #tpu.memory_space<vmem>>, vector<1x48xf32>
    %c3 = arith.constant 3 : index
    %c0_72 = arith.constant 0 : index
    %67 = vector.load %arg12[%c3, %c0_72] : memref<12x48xf32, #tpu.memory_space<vmem>>, vector<1x48xf32>
    %68 = arith.maximumf %66, %67 : vector<1x48xf32>
    %cst_73 = arith.constant 0.000000e+00 : f32
    %69 = vector.broadcast %cst_73 : f32 to vector<1x48xf32>
    %70 = arith.maximumf %68, %69 : vector<1x48xf32>
    %c1_74 = arith.constant 1 : index
    %c0_75 = arith.constant 0 : index
    %c0_76 = arith.constant 0 : index
    %71 = vector.load %arg6[%c1_74, %c0_75, %c0_76] : memref<6x48x32xf32, #tpu.memory_space<vmem>>, vector<1x48x32xf32>
    %72 = vector.shape_cast %71 : vector<1x48x32xf32> to vector<48x32xf32>
    %cst_77 = arith.constant dense<0.000000e+00> : vector<1x32xf32>
    %73 = tpu.matmul %70, %72, %cst_77 {dimension_numbers = #tpu.dot_dimension_numbers<[1], [0], [0], [1], [0, 0, 1, 1], [], []>} : vector<1x48xf32>, vector<48x32xf32>, vector<1x32xf32> -> vector<1x32xf32>
    %74 = arith.addf %65, %73 : vector<1x32xf32>
    %c4 = arith.constant 4 : index
    %c0_78 = arith.constant 0 : index
    %75 = vector.load %arg12[%c4, %c0_78] : memref<12x48xf32, #tpu.memory_space<vmem>>, vector<1x48xf32>
    %c5 = arith.constant 5 : index
    %c0_79 = arith.constant 0 : index
    %76 = vector.load %arg12[%c5, %c0_79] : memref<12x48xf32, #tpu.memory_space<vmem>>, vector<1x48xf32>
    %77 = arith.maximumf %75, %76 : vector<1x48xf32>
    %cst_80 = arith.constant 0.000000e+00 : f32
    %78 = vector.broadcast %cst_80 : f32 to vector<1x48xf32>
    %79 = arith.maximumf %77, %78 : vector<1x48xf32>
    %c2_81 = arith.constant 2 : index
    %c0_82 = arith.constant 0 : index
    %c0_83 = arith.constant 0 : index
    %80 = vector.load %arg6[%c2_81, %c0_82, %c0_83] : memref<6x48x32xf32, #tpu.memory_space<vmem>>, vector<1x48x32xf32>
    %81 = vector.shape_cast %80 : vector<1x48x32xf32> to vector<48x32xf32>
    %cst_84 = arith.constant dense<0.000000e+00> : vector<1x32xf32>
    %82 = tpu.matmul %79, %81, %cst_84 {dimension_numbers = #tpu.dot_dimension_numbers<[1], [0], [0], [1], [0, 0, 1, 1], [], []>} : vector<1x48xf32>, vector<48x32xf32>, vector<1x32xf32> -> vector<1x32xf32>
    %83 = arith.addf %74, %82 : vector<1x32xf32>
    %c6 = arith.constant 6 : index
    %c0_85 = arith.constant 0 : index
    %84 = vector.load %arg12[%c6, %c0_85] : memref<12x48xf32, #tpu.memory_space<vmem>>, vector<1x48xf32>
    %c7 = arith.constant 7 : index
    %c0_86 = arith.constant 0 : index
    %85 = vector.load %arg12[%c7, %c0_86] : memref<12x48xf32, #tpu.memory_space<vmem>>, vector<1x48xf32>
    %86 = arith.maximumf %84, %85 : vector<1x48xf32>
    %cst_87 = arith.constant 0.000000e+00 : f32
    %87 = vector.broadcast %cst_87 : f32 to vector<1x48xf32>
    %88 = arith.maximumf %86, %87 : vector<1x48xf32>
    %c3_88 = arith.constant 3 : index
    %c0_89 = arith.constant 0 : index
    %c0_90 = arith.constant 0 : index
    %89 = vector.load %arg6[%c3_88, %c0_89, %c0_90] : memref<6x48x32xf32, #tpu.memory_space<vmem>>, vector<1x48x32xf32>
    %90 = vector.shape_cast %89 : vector<1x48x32xf32> to vector<48x32xf32>
    %cst_91 = arith.constant dense<0.000000e+00> : vector<1x32xf32>
    %91 = tpu.matmul %88, %90, %cst_91 {dimension_numbers = #tpu.dot_dimension_numbers<[1], [0], [0], [1], [0, 0, 1, 1], [], []>} : vector<1x48xf32>, vector<48x32xf32>, vector<1x32xf32> -> vector<1x32xf32>
    %92 = arith.addf %83, %91 : vector<1x32xf32>
    %c8 = arith.constant 8 : index
    %c0_92 = arith.constant 0 : index
    %93 = vector.load %arg12[%c8, %c0_92] : memref<12x48xf32, #tpu.memory_space<vmem>>, vector<1x48xf32>
    %c9 = arith.constant 9 : index
    %c0_93 = arith.constant 0 : index
    %94 = vector.load %arg12[%c9, %c0_93] : memref<12x48xf32, #tpu.memory_space<vmem>>, vector<1x48xf32>
    %95 = arith.maximumf %93, %94 : vector<1x48xf32>
    %cst_94 = arith.constant 0.000000e+00 : f32
    %96 = vector.broadcast %cst_94 : f32 to vector<1x48xf32>
    %97 = arith.maximumf %95, %96 : vector<1x48xf32>
    %c4_95 = arith.constant 4 : index
    %c0_96 = arith.constant 0 : index
    %c0_97 = arith.constant 0 : index
    %98 = vector.load %arg6[%c4_95, %c0_96, %c0_97] : memref<6x48x32xf32, #tpu.memory_space<vmem>>, vector<1x48x32xf32>
    %99 = vector.shape_cast %98 : vector<1x48x32xf32> to vector<48x32xf32>
    %cst_98 = arith.constant dense<0.000000e+00> : vector<1x32xf32>
    %100 = tpu.matmul %97, %99, %cst_98 {dimension_numbers = #tpu.dot_dimension_numbers<[1], [0], [0], [1], [0, 0, 1, 1], [], []>} : vector<1x48xf32>, vector<48x32xf32>, vector<1x32xf32> -> vector<1x32xf32>
    %101 = arith.addf %92, %100 : vector<1x32xf32>
    %c10 = arith.constant 10 : index
    %c0_99 = arith.constant 0 : index
    %102 = vector.load %arg12[%c10, %c0_99] : memref<12x48xf32, #tpu.memory_space<vmem>>, vector<1x48xf32>
    %c11 = arith.constant 11 : index
    %c0_100 = arith.constant 0 : index
    %103 = vector.load %arg12[%c11, %c0_100] : memref<12x48xf32, #tpu.memory_space<vmem>>, vector<1x48xf32>
    %104 = arith.maximumf %102, %103 : vector<1x48xf32>
    %cst_101 = arith.constant 0.000000e+00 : f32
    %105 = vector.broadcast %cst_101 : f32 to vector<1x48xf32>
    %106 = arith.maximumf %104, %105 : vector<1x48xf32>
    %c5_102 = arith.constant 5 : index
    %c0_103 = arith.constant 0 : index
    %c0_104 = arith.constant 0 : index
    %107 = vector.load %arg6[%c5_102, %c0_103, %c0_104] : memref<6x48x32xf32, #tpu.memory_space<vmem>>, vector<1x48x32xf32>
    %108 = vector.shape_cast %107 : vector<1x48x32xf32> to vector<48x32xf32>
    %cst_105 = arith.constant dense<0.000000e+00> : vector<1x32xf32>
    %109 = tpu.matmul %106, %108, %cst_105 {dimension_numbers = #tpu.dot_dimension_numbers<[1], [0], [0], [1], [0, 0, 1, 1], [], []>} : vector<1x48xf32>, vector<48x32xf32>, vector<1x32xf32> -> vector<1x32xf32>
    %110 = arith.addf %101, %109 : vector<1x32xf32>
    %c1_106 = arith.constant 1 : index
    %c0_107 = arith.constant 0 : index
    %c0_108 = arith.constant 0 : index
    %111 = vector.load %arg0[%c1_106, %c0_107, %c0_108] : memref<2x16x64xf32, #tpu.memory_space<vmem>>, vector<1x14x64xf32>
    %112 = vector.shape_cast %111 : vector<1x14x64xf32> to vector<14x64xf32>
    %c0_109 = arith.constant 0 : index
    %c0_110 = arith.constant 0 : index
    %c0_111 = arith.constant 0 : index
    %113 = vector.load %arg1[%c0_109, %c0_110, %c0_111] : memref<3x64x112xf32, #tpu.memory_space<vmem>>, vector<1x64x112xf32>
    %114 = vector.shape_cast %113 : vector<1x64x112xf32> to vector<64x112xf32>
    %cst_112 = arith.constant dense<0.000000e+00> : vector<14x112xf32>
    %115 = tpu.matmul %112, %114, %cst_112 {dimension_numbers = #tpu.dot_dimension_numbers<[1], [0], [0], [1], [0, 0, 1, 1], [], []>} : vector<14x64xf32>, vector<64x112xf32>, vector<14x112xf32> -> vector<14x112xf32>
    %116 = arith.addf %2, %115 : vector<14x112xf32>
    %c1_113 = arith.constant 1 : index
    %c1_114 = arith.constant 1 : index
    %c0_115 = arith.constant 0 : index
    %117 = vector.load %arg0[%c1_113, %c1_114, %c0_115] : memref<2x16x64xf32, #tpu.memory_space<vmem>>, vector<1x14x64xf32>
    %118 = vector.shape_cast %117 : vector<1x14x64xf32> to vector<14x64xf32>
    %c1_116 = arith.constant 1 : index
    %c0_117 = arith.constant 0 : index
    %c0_118 = arith.constant 0 : index
    %119 = vector.load %arg1[%c1_116, %c0_117, %c0_118] : memref<3x64x112xf32, #tpu.memory_space<vmem>>, vector<1x64x112xf32>
    %120 = vector.shape_cast %119 : vector<1x64x112xf32> to vector<64x112xf32>
    %cst_119 = arith.constant dense<0.000000e+00> : vector<14x112xf32>
    %121 = tpu.matmul %118, %120, %cst_119 {dimension_numbers = #tpu.dot_dimension_numbers<[1], [0], [0], [1], [0, 0, 1, 1], [], []>} : vector<14x64xf32>, vector<64x112xf32>, vector<14x112xf32> -> vector<14x112xf32>
    %122 = arith.addf %116, %121 : vector<14x112xf32>
    %c1_120 = arith.constant 1 : index
    %c2_121 = arith.constant 2 : index
    %c0_122 = arith.constant 0 : index
    %123 = vector.load %arg0[%c1_120, %c2_121, %c0_122] : memref<2x16x64xf32, #tpu.memory_space<vmem>>, vector<1x14x64xf32>
    %124 = vector.shape_cast %123 : vector<1x14x64xf32> to vector<14x64xf32>
    %c2_123 = arith.constant 2 : index
    %c0_124 = arith.constant 0 : index
    %c0_125 = arith.constant 0 : index
    %125 = vector.load %arg1[%c2_123, %c0_124, %c0_125] : memref<3x64x112xf32, #tpu.memory_space<vmem>>, vector<1x64x112xf32>
    %126 = vector.shape_cast %125 : vector<1x64x112xf32> to vector<64x112xf32>
    %cst_126 = arith.constant dense<0.000000e+00> : vector<14x112xf32>
    %127 = tpu.matmul %124, %126, %cst_126 {dimension_numbers = #tpu.dot_dimension_numbers<[1], [0], [0], [1], [0, 0, 1, 1], [], []>} : vector<14x64xf32>, vector<64x112xf32>, vector<14x112xf32> -> vector<14x112xf32>
    %128 = arith.addf %122, %127 : vector<14x112xf32>
    %c0_127 = arith.constant 0 : index
    %c0_128 = arith.constant 0 : index
    %129 = vector.load %arg11[%c0_127, %c0_128] : memref<14x112xf32, #tpu.memory_space<vmem>>, vector<14x112xf32>
    tpu.vector_store %arg11[%c0_127, %c0_128], %128 {strides = array<i32>} : memref<14x112xf32, #tpu.memory_space<vmem>>, vector<14x112xf32>,
    %c0_129 = arith.constant 0 : index
    %c0_130 = arith.constant 0 : index
    %130 = vector.load %arg11[%c0_129, %c0_130] : memref<14x112xf32, #tpu.memory_space<vmem>>, vector<12x112xf32>
    %c0_131 = arith.constant 0 : index
    %c0_132 = arith.constant 0 : index
    %c0_133 = arith.constant 0 : index
    %131 = vector.load %arg3[%c0_131, %c0_132, %c0_133] : memref<3x112x48xf32, #tpu.memory_space<vmem>>, vector<1x112x48xf32>
    %132 = vector.shape_cast %131 : vector<1x112x48xf32> to vector<112x48xf32>
    %cst_134 = arith.constant dense<0.000000e+00> : vector<12x48xf32>
    %133 = tpu.matmul %130, %132, %cst_134 {dimension_numbers = #tpu.dot_dimension_numbers<[1], [0], [0], [1], [0, 0, 1, 1], [], []>} : vector<12x112xf32>, vector<112x48xf32>, vector<12x48xf32> -> vector<12x48xf32>
    %134 = arith.addf %5, %133 : vector<12x48xf32>
    %c0_135 = arith.constant 0 : index
    %c0_136 = arith.constant 0 : index
    %c0_137 = arith.constant 0 : index
    %135 = vector.load %arg4[%c0_135, %c0_136, %c0_137] : memref<3x112x48xf32, #tpu.memory_space<vmem>>, vector<1x112x48xf32>
    %136 = vector.shape_cast %135 : vector<1x112x48xf32> to vector<112x48xf32>
    %cst_138 = arith.constant dense<0.000000e+00> : vector<12x48xf32>
    %137 = tpu.matmul %130, %136, %cst_138 {dimension_numbers = #tpu.dot_dimension_numbers<[1], [0], [0], [1], [0, 0, 1, 1], [], []>} : vector<12x112xf32>, vector<112x48xf32>, vector<12x48xf32> -> vector<12x48xf32>
    %138 = arith.addf %5, %137 : vector<12x48xf32>
    %c1_139 = arith.constant 1 : index
    %c0_140 = arith.constant 0 : index
    %139 = vector.load %arg11[%c1_139, %c0_140] : memref<14x112xf32, #tpu.memory_space<vmem>>, vector<12x112xf32>
    %c1_141 = arith.constant 1 : index
    %c0_142 = arith.constant 0 : index
    %c0_143 = arith.constant 0 : index
    %140 = vector.load %arg3[%c1_141, %c0_142, %c0_143] : memref<3x112x48xf32, #tpu.memory_space<vmem>>, vector<1x112x48xf32>
    %141 = vector.shape_cast %140 : vector<1x112x48xf32> to vector<112x48xf32>
    %cst_144 = arith.constant dense<0.000000e+00> : vector<12x48xf32>
    %142 = tpu.matmul %139, %141, %cst_144 {dimension_numbers = #tpu.dot_dimension_numbers<[1], [0], [0], [1], [0, 0, 1, 1], [], []>} : vector<12x112xf32>, vector<112x48xf32>, vector<12x48xf32> -> vector<12x48xf32>
    %143 = arith.addf %134, %142 : vector<12x48xf32>
    %c1_145 = arith.constant 1 : index
    %c0_146 = arith.constant 0 : index
    %c0_147 = arith.constant 0 : index
    %144 = vector.load %arg4[%c1_145, %c0_146, %c0_147] : memref<3x112x48xf32, #tpu.memory_space<vmem>>, vector<1x112x48xf32>
    %145 = vector.shape_cast %144 : vector<1x112x48xf32> to vector<112x48xf32>
    %cst_148 = arith.constant dense<0.000000e+00> : vector<12x48xf32>
    %146 = tpu.matmul %139, %145, %cst_148 {dimension_numbers = #tpu.dot_dimension_numbers<[1], [0], [0], [1], [0, 0, 1, 1], [], []>} : vector<12x112xf32>, vector<112x48xf32>, vector<12x48xf32> -> vector<12x48xf32>
    %147 = arith.addf %138, %146 : vector<12x48xf32>
    %c2_149 = arith.constant 2 : index
    %c0_150 = arith.constant 0 : index
    %148 = vector.load %arg11[%c2_149, %c0_150] : memref<14x112xf32, #tpu.memory_space<vmem>>, vector<12x112xf32>
    %c2_151 = arith.constant 2 : index
    %c0_152 = arith.constant 0 : index
    %c0_153 = arith.constant 0 : index
    %149 = vector.load %arg3[%c2_151, %c0_152, %c0_153] : memref<3x112x48xf32, #tpu.memory_space<vmem>>, vector<1x112x48xf32>
    %150 = vector.shape_cast %149 : vector<1x112x48xf32> to vector<112x48xf32>
    %cst_154 = arith.constant dense<0.000000e+00> : vector<12x48xf32>
    %151 = tpu.matmul %148, %150, %cst_154 {dimension_numbers = #tpu.dot_dimension_numbers<[1], [0], [0], [1], [0, 0, 1, 1], [], []>} : vector<12x112xf32>, vector<112x48xf32>, vector<12x48xf32> -> vector<12x48xf32>
    %152 = arith.addf %143, %151 : vector<12x48xf32>
    %c2_155 = arith.constant 2 : index
    %c0_156 = arith.constant 0 : index
    %c0_157 = arith.constant 0 : index
    %153 = vector.load %arg4[%c2_155, %c0_156, %c0_157] : memref<3x112x48xf32, #tpu.memory_space<vmem>>, vector<1x112x48xf32>
    %154 = vector.shape_cast %153 : vector<1x112x48xf32> to vector<112x48xf32>
    %cst_158 = arith.constant dense<0.000000e+00> : vector<12x48xf32>
    %155 = tpu.matmul %148, %154, %cst_158 {dimension_numbers = #tpu.dot_dimension_numbers<[1], [0], [0], [1], [0, 0, 1, 1], [], []>} : vector<12x112xf32>, vector<112x48xf32>, vector<12x48xf32> -> vector<12x48xf32>
    %156 = arith.addf %147, %155 : vector<12x48xf32>
    %157 = arith.maximumf %152, %156 : vector<12x48xf32>
    %c0_159 = arith.constant 0 : index
    %c0_160 = arith.constant 0 : index
    %158 = vector.load %arg12[%c0_159, %c0_160] : memref<12x48xf32, #tpu.memory_space<vmem>>, vector<12x48xf32>
    tpu.vector_store %arg12[%c0_159, %c0_160], %157 {strides = array<i32>} : memref<12x48xf32, #tpu.memory_space<vmem>>, vector<12x48xf32>,
    %c0_161 = arith.constant 0 : index
    %c0_162 = arith.constant 0 : index
    %159 = vector.load %arg12[%c0_161, %c0_162] : memref<12x48xf32, #tpu.memory_space<vmem>>, vector<1x48xf32>
    %c1_163 = arith.constant 1 : index
    %c0_164 = arith.constant 0 : index
    %160 = vector.load %arg12[%c1_163, %c0_164] : memref<12x48xf32, #tpu.memory_space<vmem>>, vector<1x48xf32>
    %161 = arith.maximumf %159, %160 : vector<1x48xf32>
    %cst_165 = arith.constant 0.000000e+00 : f32
    %162 = vector.broadcast %cst_165 : f32 to vector<1x48xf32>
    %163 = arith.maximumf %161, %162 : vector<1x48xf32>
    %c0_166 = arith.constant 0 : index
    %c0_167 = arith.constant 0 : index
    %c0_168 = arith.constant 0 : index
    %164 = vector.load %arg6[%c0_166, %c0_167, %c0_168] : memref<6x48x32xf32, #tpu.memory_space<vmem>>, vector<1x48x32xf32>
    %165 = vector.shape_cast %164 : vector<1x48x32xf32> to vector<48x32xf32>
    %cst_169 = arith.constant dense<0.000000e+00> : vector<1x32xf32>
    %166 = tpu.matmul %163, %165, %cst_169 {dimension_numbers = #tpu.dot_dimension_numbers<[1], [0], [0], [1], [0, 0, 1, 1], [], []>} : vector<1x48xf32>, vector<48x32xf32>, vector<1x32xf32> -> vector<1x32xf32>
    %167 = arith.addf %6, %166 : vector<1x32xf32>
    %c2_170 = arith.constant 2 : index
    %c0_171 = arith.constant 0 : index
    %168 = vector.load %arg12[%c2_170, %c0_171] : memref<12x48xf32, #tpu.memory_space<vmem>>, vector<1x48xf32>
    %c3_172 = arith.constant 3 : index
    %c0_173 = arith.constant 0 : index
    %169 = vector.load %arg12[%c3_172, %c0_173] : memref<12x48xf32, #tpu.memory_space<vmem>>, vector<1x48xf32>
    %170 = arith.maximumf %168, %169 : vector<1x48xf32>
    %cst_174 = arith.constant 0.000000e+00 : f32
    %171 = vector.broadcast %cst_174 : f32 to vector<1x48xf32>
    %172 = arith.maximumf %170, %171 : vector<1x48xf32>
    %c1_175 = arith.constant 1 : index
    %c0_176 = arith.constant 0 : index
    %c0_177 = arith.constant 0 : index
    %173 = vector.load %arg6[%c1_175, %c0_176, %c0_177] : memref<6x48x32xf32, #tpu.memory_space<vmem>>, vector<1x48x32xf32>
    %174 = vector.shape_cast %173 : vector<1x48x32xf32> to vector<48x32xf32>
    %cst_178 = arith.constant dense<0.000000e+00> : vector<1x32xf32>
    %175 = tpu.matmul %172, %174, %cst_178 {dimension_numbers = #tpu.dot_dimension_numbers<[1], [0], [0], [1], [0, 0, 1, 1], [], []>} : vector<1x48xf32>, vector<48x32xf32>, vector<1x32xf32> -> vector<1x32xf32>
    %176 = arith.addf %167, %175 : vector<1x32xf32>
    %c4_179 = arith.constant 4 : index
    %c0_180 = arith.constant 0 : index
    %177 = vector.load %arg12[%c4_179, %c0_180] : memref<12x48xf32, #tpu.memory_space<vmem>>, vector<1x48xf32>
    %c5_181 = arith.constant 5 : index
    %c0_182 = arith.constant 0 : index
    %178 = vector.load %arg12[%c5_181, %c0_182] : memref<12x48xf32, #tpu.memory_space<vmem>>, vector<1x48xf32>
    %179 = arith.maximumf %177, %178 : vector<1x48xf32>
    %cst_183 = arith.constant 0.000000e+00 : f32
    %180 = vector.broadcast %cst_183 : f32 to vector<1x48xf32>
    %181 = arith.maximumf %179, %180 : vector<1x48xf32>
    %c2_184 = arith.constant 2 : index
    %c0_185 = arith.constant 0 : index
    %c0_186 = arith.constant 0 : index
    %182 = vector.load %arg6[%c2_184, %c0_185, %c0_186] : memref<6x48x32xf32, #tpu.memory_space<vmem>>, vector<1x48x32xf32>
    %183 = vector.shape_cast %182 : vector<1x48x32xf32> to vector<48x32xf32>
    %cst_187 = arith.constant dense<0.000000e+00> : vector<1x32xf32>
    %184 = tpu.matmul %181, %183, %cst_187 {dimension_numbers = #tpu.dot_dimension_numbers<[1], [0], [0], [1], [0, 0, 1, 1], [], []>} : vector<1x48xf32>, vector<48x32xf32>, vector<1x32xf32> -> vector<1x32xf32>
    %185 = arith.addf %176, %184 : vector<1x32xf32>
    %c6_188 = arith.constant 6 : index
    %c0_189 = arith.constant 0 : index
    %186 = vector.load %arg12[%c6_188, %c0_189] : memref<12x48xf32, #tpu.memory_space<vmem>>, vector<1x48xf32>
    %c7_190 = arith.constant 7 : index
    %c0_191 = arith.constant 0 : index
    %187 = vector.load %arg12[%c7_190, %c0_191] : memref<12x48xf32, #tpu.memory_space<vmem>>, vector<1x48xf32>
    %188 = arith.maximumf %186, %187 : vector<1x48xf32>
    %cst_192 = arith.constant 0.000000e+00 : f32
    %189 = vector.broadcast %cst_192 : f32 to vector<1x48xf32>
    %190 = arith.maximumf %188, %189 : vector<1x48xf32>
    %c3_193 = arith.constant 3 : index
    %c0_194 = arith.constant 0 : index
    %c0_195 = arith.constant 0 : index
    %191 = vector.load %arg6[%c3_193, %c0_194, %c0_195] : memref<6x48x32xf32, #tpu.memory_space<vmem>>, vector<1x48x32xf32>
    %192 = vector.shape_cast %191 : vector<1x48x32xf32> to vector<48x32xf32>
    %cst_196 = arith.constant dense<0.000000e+00> : vector<1x32xf32>
    %193 = tpu.matmul %190, %192, %cst_196 {dimension_numbers = #tpu.dot_dimension_numbers<[1], [0], [0], [1], [0, 0, 1, 1], [], []>} : vector<1x48xf32>, vector<48x32xf32>, vector<1x32xf32> -> vector<1x32xf32>
    %194 = arith.addf %185, %193 : vector<1x32xf32>
    %c8_197 = arith.constant 8 : index
    %c0_198 = arith.constant 0 : index
    %195 = vector.load %arg12[%c8_197, %c0_198] : memref<12x48xf32, #tpu.memory_space<vmem>>, vector<1x48xf32>
    %c9_199 = arith.constant 9 : index
    %c0_200 = arith.constant 0 : index
    %196 = vector.load %arg12[%c9_199, %c0_200] : memref<12x48xf32, #tpu.memory_space<vmem>>, vector<1x48xf32>
    %197 = arith.maximumf %195, %196 : vector<1x48xf32>
    %cst_201 = arith.constant 0.000000e+00 : f32
    %198 = vector.broadcast %cst_201 : f32 to vector<1x48xf32>
    %199 = arith.maximumf %197, %198 : vector<1x48xf32>
    %c4_202 = arith.constant 4 : index
    %c0_203 = arith.constant 0 : index
    %c0_204 = arith.constant 0 : index
    %200 = vector.load %arg6[%c4_202, %c0_203, %c0_204] : memref<6x48x32xf32, #tpu.memory_space<vmem>>, vector<1x48x32xf32>
    %201 = vector.shape_cast %200 : vector<1x48x32xf32> to vector<48x32xf32>
    %cst_205 = arith.constant dense<0.000000e+00> : vector<1x32xf32>
    %202 = tpu.matmul %199, %201, %cst_205 {dimension_numbers = #tpu.dot_dimension_numbers<[1], [0], [0], [1], [0, 0, 1, 1], [], []>} : vector<1x48xf32>, vector<48x32xf32>, vector<1x32xf32> -> vector<1x32xf32>
    %203 = arith.addf %194, %202 : vector<1x32xf32>
    %c10_206 = arith.constant 10 : index
    %c0_207 = arith.constant 0 : index
    %204 = vector.load %arg12[%c10_206, %c0_207] : memref<12x48xf32, #tpu.memory_space<vmem>>, vector<1x48xf32>
    %c11_208 = arith.constant 11 : index
    %c0_209 = arith.constant 0 : index
    %205 = vector.load %arg12[%c11_208, %c0_209] : memref<12x48xf32, #tpu.memory_space<vmem>>, vector<1x48xf32>
    %206 = arith.maximumf %204, %205 : vector<1x48xf32>
    %cst_210 = arith.constant 0.000000e+00 : f32
    %207 = vector.broadcast %cst_210 : f32 to vector<1x48xf32>
    %208 = arith.maximumf %206, %207 : vector<1x48xf32>
    %c5_211 = arith.constant 5 : index
    %c0_212 = arith.constant 0 : index
    %c0_213 = arith.constant 0 : index
    %209 = vector.load %arg6[%c5_211, %c0_212, %c0_213] : memref<6x48x32xf32, #tpu.memory_space<vmem>>, vector<1x48x32xf32>
    %210 = vector.shape_cast %209 : vector<1x48x32xf32> to vector<48x32xf32>
    %cst_214 = arith.constant dense<0.000000e+00> : vector<1x32xf32>
    %211 = tpu.matmul %208, %210, %cst_214 {dimension_numbers = #tpu.dot_dimension_numbers<[1], [0], [0], [1], [0, 0, 1, 1], [], []>} : vector<1x48xf32>, vector<48x32xf32>, vector<1x32xf32> -> vector<1x32xf32>
    %212 = arith.addf %203, %211 : vector<1x32xf32>
    %213 = tpu.concatenate %110, %212 in 0 : vector<1x32xf32>, vector<1x32xf32> -> vector<2x32xf32>
    %cst_215 = arith.constant dense<0.000000e+00> : vector<2x10xf32>
    %214 = tpu.matmul %213, %7, %cst_215 {dimension_numbers = #tpu.dot_dimension_numbers<[1], [0], [0], [1], [0, 0, 1, 1], [], []>} : vector<2x32xf32>, vector<32x10xf32>, vector<2x10xf32> -> vector<2x10xf32>
    %215 = vector.broadcast %8 : vector<1x10xf32> to vector<2x10xf32>
    %216 = arith.addf %214, %215 : vector<2x10xf32>
    %cst_216 = arith.constant dense<0xFF800000> : vector<2xf32>
    %217 = vector.multi_reduction <maximumf>, %216, %cst_216 [1] : vector<2x10xf32> to vector<2xf32>
    %218 = vector.shape_cast %217 : vector<2xf32> to vector<2x1xf32>
    %219 = vector.broadcast %218 : vector<2x1xf32> to vector<2x10xf32>
    %220 = arith.subf %216, %219 : vector<2x10xf32>
    %221 = math.exp %220 : vector<2x10xf32>
    %cst_217 = arith.constant dense<0.000000e+00> : vector<2xf32>
    %222 = vector.multi_reduction <add>, %221, %cst_217 [1] : vector<2x10xf32> to vector<2xf32>
    %223 = vector.shape_cast %222 : vector<2xf32> to vector<2x1xf32>
    %224 = math.log %223 : vector<2x1xf32>
    %225 = arith.addf %224, %218 : vector<2x1xf32>
    %226 = vector.broadcast %225 : vector<2x1xf32> to vector<2x10xf32>
    %227 = arith.subf %216, %226 : vector<2x10xf32>
    %c0_218 = arith.constant 0 : index
    %c0_219 = arith.constant 0 : index
    %228 = vector.load %arg10[%c0_218, %c0_219] : memref<2x10xf32, #tpu.memory_space<vmem>>, vector<2x10xf32>
    tpu.vector_store %arg10[%c0_218, %c0_219], %227 {strides = array<i32>} : memref<2x10xf32, #tpu.memory_space<vmem>>, vector<2x10xf32>,
    return
  }
}

</mosaic_0001>

<bundles_post_ra>
// kernel: net_forward.1
= control target key start
LH: loop header
LB: loop body
LE: loop exit
PB: predicated region body
PF: predicated region fallthrough
CT: control target
= control target key end

     0   :  { %s5378_s0 = inlined_call_operand.vmem [shape: f32[2,16,64], index: 0, kind: input, shape index: {}]   ;;  %s5379_s1 = inlined_call_operand.vmem [shape: f32[3,64,112], index: 1, kind: input, shape index: {}]   ;;  %s5380_s2 = inlined_call_operand.vmem [shape: f32[1,112], index: 2, kind: input, shape index: {}]   ;;  %s5381_s3 = inlined_call_operand.vmem [shape: f32[3,112,48], index: 3, kind: input, shape index: {}]   ;;  %s5382_s4 = inlined_call_operand.vmem [shape: f32[3,112,48], index: 4, kind: input, shape index: {}]   ;;  %s5383_s5 = inlined_call_operand.vmem [shape: f32[1,48], index: 5, kind: input, shape index: {}]   ;;  %s5384_s6 = inlined_call_operand.vmem [shape: f32[6,48,32], index: 6, kind: input, shape index: {}]   ;;  %s5385_s7 = inlined_call_operand.vmem [shape: f32[1,32], index: 7, kind: input, shape index: {}]   ;;  %s5386_s8 = inlined_call_operand.vmem [shape: f32[32,10], index: 8, kind: input, shape index: {}]   ;;  %s5387_s9 = inlined_call_operand.vmem [shape: f32[1,10], index: 9, kind: input, shape index: {}]   ;;  %s5388_s10 = inlined_call_operand.hbm [shape: f32[2,10], index: 10, kind: output, shape index: {}]  }
   0x1   :  { %v65_v0 = vld [vmem:[%s5379_s1 + $0x38] sm:$0xff]  ;;  %v64_v1 = vld [vmem:[%s5379_s1 + $0x30] sm:$0xff]  ;;  %v63_v4 = vld [vmem:[%s5379_s1 + $0x28] sm:$0xff] }
   0x2   :  { %v2919_v2 = vld [vmem:[%s5379_s1 + $0x78] sm:$0xff]  ;;  %3511 = vmatprep.subr.mxu0 %v65_v0  ;;  %v2918_v3 = vld [vmem:[%s5379_s1 + $0x70] sm:$0xff]  ;;  %v2917_v5 = vld [vmem:[%s5379_s1 + $0x68] sm:$0xff] }
   0x3   :  { %3530 = vmatprep.subr.mxu1 %v2919_v2  ;;  %3512 = vmatpush3.msra.mxu0 %v65_v0  ;;  %v62_v6 = vld [vmem:[%s5379_s1 + $0x20] sm:$0xff]  ;;  %v61_v8 = vld [vmem:[%s5379_s1 + $0x18] sm:$0xff]  ;;  %v60_v10 = vld [vmem:[%s5379_s1 + $0x10] sm:$0xff] }
   0x4   :  { %3531 = vmatpush3.msra.mxu1 %v2919_v2  ;;  %3513 = vmatprep.subr.mxu0 %v64_v1  ;;  %v2916_v7 = vld [vmem:[%s5379_s1 + $0x60] sm:$0xff]  ;;  %v2915_v9 = vld [vmem:[%s5379_s1 + $0x58] sm:$0xff]  ;;  %v2914_v11 = vld [vmem:[%s5379_s1 + $0x50] sm:$0xff] }
   0x5   :  { %3532 = vmatprep.subr.mxu1 %v2918_v3  ;;  %3514 = vmatpush3.msra.mxu0 %v64_v1  ;;  %v59_v12 = vld [vmem:[%s5379_s1 + $0x8] sm:$0xff] }
   0x6   :  { %3533 = vmatpush3.msra.mxu1 %v2918_v3  ;;  %3515 = vmatprep.subr.mxu0 %v63_v4  ;;  %v2913_v13 = vld [vmem:[%s5379_s1 + $0x48] sm:$0xff] }
   0x7   :  { %3534 = vmatprep.subr.mxu1 %v2917_v5  ;;  %3516 = vmatpush3.msra.mxu0 %v63_v4 }
   0x8   :  { %3535 = vmatpush3.msra.mxu1 %v2917_v5  ;;  %3517 = vmatprep.subr.mxu0 %v62_v6 }
   0x9   :  { %3536 = vmatprep.subr.mxu1 %v2916_v7  ;;  %3518 = vmatpush3.msra.mxu0 %v62_v6 }
   0xa   :  { %3537 = vmatpush3.msra.mxu1 %v2916_v7  ;;  %3519 = vmatprep.subr.mxu0 %v61_v8 }
   0xb   :  { %3538 = vmatprep.subr.mxu1 %v2915_v9  ;;  %3520 = vmatpush3.msra.mxu0 %v61_v8 }
   0xc   :  { %3539 = vmatpush3.msra.mxu1 %v2915_v9 }
   0xd   :  { %15 = vsyncpa [#allocation5], 0  ;;  %3521 = vmatprep.subr.mxu0 %v60_v10  ;;  %3540 = vmatprep.subr.mxu1 %v2914_v11  ;;  %v56_v14 = vld [vmem:[%s5378_s0] sm:$0xff]  ;;  %vm66_vm0 = vcmask 523264   ;;  %v57_v17 = vld [vmem:[%s5378_s0 + $0x8] sm:$0x3f] }
   0xe   :  { %3522 = vmatpush3.msra.mxu0 %v60_v10  ;;  %3541 = vmatpush3.msra.mxu1 %v2914_v11  ;;  %v58_v15 = vld [vmem:[%s5379_s1] sm:$0xff]  ;;  %v2929_v18 = vld [vmem:[%s5379_s1 + $0xb8] sm:$0xff]  ;;  %v151_v20 = vld [vmem:[%s5378_s0 + $0x9] sm:$0x3f]  ;;  %vm340_vm1 = vcmask 914432   ;;  %vm338_vm2 = vcmask 916480  }
   0xf   :  { %3523 = vmatprep.subr.mxu0 %v59_v12  ;;  %3542 = vmatprep.subr.mxu1 %v2913_v13  ;;  %v2912_v16 = vld [vmem:[%s5379_s1 + $0x40] sm:$0xff]  ;;  %v2928_v21 = vld [vmem:[%s5379_s1 + $0xb0] sm:$0xff]  ;;  %v2927_v23 = vld [vmem:[%s5379_s1 + $0xa8] sm:$0xff]  ;;  %vm4220_vm3 = vmmov 0   ;;  %vm920_vm4 = vcmask 388096   ;;  %vm918_vm5 = vcmask 392192  }
  0x10   :  { %3524 = vmatpush3.msra.mxu0 %v59_v12  ;;  %3527 = vmatprep.mubr.msk.f32.mxu0 %vm66_vm0, %v56_v14  ;;  %v150_v19 = vld [vmem:[%s5378_s0 + $0x1] sm:$0xff]  ;;  %v2925_v25 = vld [vmem:[%s5379_s1 + $0x98] sm:$0xff]  ;;  %v2924_v26 = vld [vmem:[%s5379_s1 + $0x90] sm:$0xff]  ;;  %vm2797_vm6 = vcmask 1040384   ;;  %vm2805_vm7 = vcmask 261120   ;;  %vm2879_vm8 = vcmask 74752  }
  0x11   :  { %3525 = vmatprep.subr.mxu0 %v58_v15  ;;  %3543 = vmatpush3.msra.mxu1 %v2913_v13  ;;  %v244_v22 = vld [vmem:[%s5378_s0 + $0x2] sm:$0xff]  ;;  %v245_v29 = vld [vmem:[%s5378_s0 + $0xa] sm:$0x3f]  ;;  %v355_v34 = vld [vmem:[%s5381_s3 + $0x58] sm:$0xff] }
  0x12   :  { %3526 = vmatpush3.msra.mxu0 %v58_v15  ;;  %3544 = vmatprep.subr.mxu1 %v2912_v16  ;;  %v2926_v24 = vld [vmem:[%s5379_s1 + $0xa0] sm:$0xff]  ;;  %v2923_v27 = vld [vmem:[%s5379_s1 + $0x88] sm:$0xff]  ;;  %v452_v35 = vld [vmem:[%s5382_s4 + $0x58] sm:$0xff] }
  0x13   :  { %3528 = vmatmul.mubr.msk.f32.vlgmr.msra.gmra.mxu0 %vm66_vm0, %v57_v17  ;;  %3549 = vmatprep.subr.mxu0 %v2929_v18  ;;  %v2922_v28 = vld [vmem:[%s5379_s1 + $0x80] sm:$0xff]  ;;  %v357_v30 = vld [vmem:[%s5381_s3 + $0x68] sm:$0xff]  ;;  %v354_v36 = vld [vmem:[%s5381_s3 + $0x50] sm:$0xff] }
  0x14   :  { %3545 = vmatpush3.msra.mxu1 %v2912_v16  ;;  %3546 = vmatprep.mubr.msk.f32.mxu1 %vm66_vm0, %v150_v19  ;;  %v454_v31 = vld [vmem:[%s5382_s4 + $0x68] sm:$0xff]  ;;  %v356_v32 = vld [vmem:[%s5381_s3 + $0x60] sm:$0xff]  ;;  %v451_v37 = vld [vmem:[%s5382_s4 + $0x50] sm:$0xff] }
  0x15   :  { %3550 = vmatpush3.msra.mxu0 %v2929_v18  ;;  %3547 = vmatmul.mubr.msk.f32.vlgmr.msra.gmra.mxu1 %vm66_vm0, %v151_v20  ;;  %v453_v33 = vld [vmem:[%s5382_s4 + $0x60] sm:$0xff]  ;;  %v353_v38 = vld [vmem:[%s5381_s3 + $0x48] sm:$0xff]  ;;  %v351_v42 = vld [vmem:[%s5381_s3 + $0x38] sm:$0xff] }
  0x16   :  { %3551 = vmatprep.subr.mxu0 %v2928_v21  ;;  %3565 = vmatprep.mubr.msk.f32.mxu0 %vm66_vm0, %v244_v22  ;;  %v450_v39 = vld [vmem:[%s5382_s4 + $0x48] sm:$0xff]  ;;  %v352_v40 = vld [vmem:[%s5381_s3 + $0x40] sm:$0xff]  ;;  %v448_v43 = vld [vmem:[%s5382_s4 + $0x38] sm:$0xff] }
  0x17   :  { %3552 = vmatpush3.msra.mxu0 %v2928_v21  ;;  %3568 = vmatprep.subr.mxu1 %v357_v30  ;;  %v449_v41 = vld [vmem:[%s5382_s4 + $0x40] sm:$0xff]  ;;  %v350_v44 = vld [vmem:[%s5381_s3 + $0x30] sm:$0xff]  ;;  %v349_v46 = vld [vmem:[%s5381_s3 + $0x28] sm:$0xff] }
  0x18   :  { %3553 = vmatprep.subr.mxu0 %v2927_v23  ;;  %3569 = vmatpush3.msra.mxu1 %v357_v30  ;;  %v447_v45 = vld [vmem:[%s5382_s4 + $0x30] sm:$0xff]  ;;  %v446_v47 = vld [vmem:[%s5382_s4 + $0x28] sm:$0xff]  ;;  %v348_v48 = vld [vmem:[%s5381_s3 + $0x20] sm:$0xff] }
  0x19   :  { %3554 = vmatpush3.msra.mxu0 %v2927_v23  ;;  %3570 = vmatprep.subr.mxu1 %v356_v32  ;;  %v445_v49 = vld [vmem:[%s5382_s4 + $0x20] sm:$0xff]  ;;  %v347_v50 = vld [vmem:[%s5381_s3 + $0x18] sm:$0xff]  ;;  %v346_v52 = vld [vmem:[%s5381_s3 + $0x10] sm:$0xff] }
  0x1a   :  { %3555 = vmatprep.subr.mxu0 %v2926_v24  ;;  %3571 = vmatpush3.msra.mxu1 %v356_v32  ;;  %v444_v51 = vld [vmem:[%s5382_s4 + $0x18] sm:$0xff]  ;;  %v443_v53 = vld [vmem:[%s5382_s4 + $0x10] sm:$0xff]  ;;  %v345_v54 = vld [vmem:[%s5381_s3 + $0x8] sm:$0xff] }
  0x1b   :  { %3556 = vmatpush3.msra.mxu0 %v2926_v24  ;;  %3572 = vmatprep.subr.mxu1 %v355_v34  ;;  %v442_v55 = vld [vmem:[%s5382_s4 + $0x8] sm:$0xff]  ;;  %v344_v56 = vld [vmem:[%s5381_s3] sm:$0xff]  ;;  %v2949_v58 = vld [vmem:[%s5381_s3 + $0xd8] sm:$0xff] }
  0x1c   :  { %3557 = vmatprep.subr.mxu0 %v2925_v25  ;;  %3573 = vmatpush3.msra.mxu1 %v355_v34  ;;  %v441_v57 = vld [vmem:[%s5382_s4] sm:$0xff]  ;;  %v2965_v59 = vld [vmem:[%s5382_s4 + $0xd8] sm:$0xff]  ;;  %v2948_v11 = vld [vmem:[%s5381_s3 + $0xd0] sm:$0xff] }
  0x1d   :  { %3558 = vmatpush3.msra.mxu0 %v2925_v25  ;;  %3574 = vmatprep.subr.mxu1 %v354_v36  ;;  %v2908_v61 = vld [vmem:[%s5380_s2] ss:$0 sm:$0xff]  ;;  %v2964_v12 = vld [vmem:[%s5382_s4 + $0xd0] sm:$0xff]  ;;  %v2947_v14 = vld [vmem:[%s5381_s3 + $0xc8] sm:$0xff] }
  0x1e   :  { %3559 = vmatprep.subr.mxu0 %v2924_v26  ;;  %3575 = vmatpush3.msra.mxu1 %v354_v36  ;;  %v2963_v15 = vld [vmem:[%s5382_s4 + $0xc8] sm:$0xff]  ;;  %v2946_v16 = vld [vmem:[%s5381_s3 + $0xc0] sm:$0xff]  ;;  %v2945_v18 = vld [vmem:[%s5381_s3 + $0xb8] sm:$0xff] }
  0x1f   :  { %3560 = vmatpush3.msra.mxu0 %v2924_v26  ;;  %3576 = vmatprep.subr.mxu1 %v353_v38  ;;  %v2962_v17 = vld [vmem:[%s5382_s4 + $0xc0] sm:$0xff]  ;;  %v2961_v19 = vld [vmem:[%s5382_s4 + $0xb8] sm:$0xff]  ;;  %v2944_v20 = vld [vmem:[%s5381_s3 + $0xb0] sm:$0xff] }
  0x20   :  { %3561 = vmatprep.subr.mxu0 %v2923_v27  ;;  %3577 = vmatpush3.msra.mxu1 %v353_v38  ;;  %v2960_v21 = vld [vmem:[%s5382_s4 + $0xb0] sm:$0xff]  ;;  %v2943_v22 = vld [vmem:[%s5381_s3 + $0xa8] sm:$0xff]  ;;  %v2942_v24 = vld [vmem:[%s5381_s3 + $0xa0] sm:$0xff] }
  0x21   :  { %3562 = vmatpush3.msra.mxu0 %v2923_v27  ;;  %3578 = vmatprep.subr.mxu1 %v352_v40  ;;  %v2959_v23 = vld [vmem:[%s5382_s4 + $0xa8] sm:$0xff]  ;;  %v2958_v25 = vld [vmem:[%s5382_s4 + $0xa0] sm:$0xff]  ;;  %v2941_v26 = vld [vmem:[%s5381_s3 + $0x98] sm:$0xff] }
  0x22   :  { %3563 = vmatprep.subr.mxu0 %v2922_v28  ;;  %3579 = vmatpush3.msra.mxu1 %v352_v40  ;;  %v2957_v27 = vld [vmem:[%s5382_s4 + $0x98] sm:$0xff]  ;;  %v2939_v30 = vld [vmem:[%s5381_s3 + $0x88] sm:$0xff]  ;;  %v2938_v32 = vld [vmem:[%s5381_s3 + $0x80] sm:$0xff] }
  0x23   :  { %3564 = vmatpush3.msra.mxu0 %v2922_v28  ;;  %3580 = vmatprep.subr.mxu1 %v351_v42  ;;  %v2940_v28 = vld [vmem:[%s5381_s3 + $0x90] sm:$0xff]  ;;  %v2937_v34 = vld [vmem:[%s5381_s3 + $0x78] sm:$0xff]  ;;  %v2981_v38 = vld [vmem:[%s5381_s3 + $0x148] sm:$0xff] }
  0x24   :  { %3566 = vmatmul.mubr.msk.f32.vlgmr.msra.gmra.mxu0 %vm66_vm0, %v245_v29  ;;  %3599 = vmatprep.subr.mxu0 %v454_v31  ;;  %v2956_v29 = vld [vmem:[%s5382_s4 + $0x90] sm:$0xff] }
  0x25   :  { %3600 = vmatpush3.msra.mxu0 %v454_v31  ;;  %3581 = vmatpush3.msra.mxu1 %v351_v42  ;;  %v2955_v31 = vld [vmem:[%s5382_s4 + $0x88] sm:$0xff]  ;;  %v2936_v36 = vld [vmem:[%s5381_s3 + $0x70] sm:$0xff]  ;;  %v2980_v42 = vld [vmem:[%s5381_s3 + $0x140] sm:$0xff] }
  0x26   :  { %3601 = vmatprep.subr.mxu0 %v453_v33  ;;  %3582 = vmatprep.subr.mxu1 %v350_v44 }
  0x27   :  { %3602 = vmatpush3.msra.mxu0 %v453_v33  ;;  %3583 = vmatpush3.msra.mxu1 %v350_v44  ;;  %v2954_v33 = vld [vmem:[%s5382_s4 + $0x80] sm:$0xff]  ;;  %v2979_v44 = vld [vmem:[%s5381_s3 + $0x138] sm:$0xff] }
  0x28   :  { %3603 = vmatprep.subr.mxu0 %v452_v35  ;;  %3584 = vmatprep.subr.mxu1 %v349_v46 }
  0x29   :  { %3604 = vmatpush3.msra.mxu0 %v452_v35  ;;  %3585 = vmatpush3.msra.mxu1 %v349_v46  ;;  %v2953_v35 = vld [vmem:[%s5382_s4 + $0x78] sm:$0xff]  ;;  %v2978_v46 = vld [vmem:[%s5381_s3 + $0x130] sm:$0xff] }
  0x2a   :  { %3605 = vmatprep.subr.mxu0 %v451_v37  ;;  %3586 = vmatprep.subr.mxu1 %v348_v48 }
  0x2b   :  { %3606 = vmatpush3.msra.mxu0 %v451_v37  ;;  %3587 = vmatpush3.msra.mxu1 %v348_v48  ;;  %v2952_v37 = vld [vmem:[%s5382_s4 + $0x70] sm:$0xff]  ;;  %v2977_v48 = vld [vmem:[%s5381_s3 + $0x128] sm:$0xff] }
  0x2c   :  { %3607 = vmatprep.subr.mxu0 %v450_v39  ;;  %3588 = vmatprep.subr.mxu1 %v347_v50 }
  0x2d   :  { %3608 = vmatpush3.msra.mxu0 %v450_v39  ;;  %3589 = vmatpush3.msra.mxu1 %v347_v50  ;;  %v2997_v39 = vld [vmem:[%s5382_s4 + $0x148] sm:$0xff]  ;;  %v2976_v50 = vld [vmem:[%s5381_s3 + $0x120] sm:$0xff] }
  0x2e   :  { %3609 = vmatprep.subr.mxu0 %v449_v41  ;;  %3590 = vmatprep.subr.mxu1 %v346_v52 }
  0x2f   :  { %3610 = vmatpush3.msra.mxu0 %v449_v41  ;;  %3591 = vmatpush3.msra.mxu1 %v346_v52  ;;  %v2975_v52 = vld [vmem:[%s5381_s3 + $0x118] sm:$0xff] }
  0x30   :  { %3611 = vmatprep.subr.mxu0 %v448_v43  ;;  %3592 = vmatprep.subr.mxu1 %v345_v54 }
  0x31   :  { %3612 = vmatpush3.msra.mxu0 %v448_v43  ;;  %3593 = vmatpush3.msra.mxu1 %v345_v54  ;;  %v2996_v43 = vld [vmem:[%s5382_s4 + $0x140] sm:$0xff]  ;;  %v2974_v54 = vld [vmem:[%s5381_s3 + $0x110] sm:$0xff] }
  0x32   :  { %3613 = vmatprep.subr.mxu0 %v447_v45  ;;  %3594 = vmatprep.subr.mxu1 %v344_v56 }
  0x33   :  { %3614 = vmatpush3.msra.mxu0 %v447_v45  ;;  %3595 = vmatpush3.msra.mxu1 %v344_v56  ;;  %v2995_v45 = vld [vmem:[%s5382_s4 + $0x138] sm:$0xff]  ;;  %v2973_v56 = vld [vmem:[%s5381_s3 + $0x108] sm:$0xff] }
  0x34   :  { %3615 = vmatprep.subr.mxu0 %v446_v47  ;;  %3630 = vmatprep.subr.mxu1 %v2949_v58 }
  0x35   :  { %3616 = vmatpush3.msra.mxu0 %v446_v47  ;;  %v2994_v47 = vld [vmem:[%s5382_s4 + $0x130] sm:$0xff] }
  0x36   :  { %3617 = vmatprep.subr.mxu0 %v445_v49 }
  0x37   :  { %3618 = vmatpush3.msra.mxu0 %v445_v49  ;;  %v2993_v49 = vld [vmem:[%s5382_s4 + $0x128] sm:$0xff] }
  0x38   :  { %3619 = vmatprep.subr.mxu0 %v444_v51 }
  0x39   :  { %3620 = vmatpush3.msra.mxu0 %v444_v51  ;;  %v2992_v51 = vld [vmem:[%s5382_s4 + $0x120] sm:$0xff] }
  0x3a   :  { %3621 = vmatprep.subr.mxu0 %v443_v53 }
  0x3b   :  { %3622 = vmatpush3.msra.mxu0 %v443_v53  ;;  %v2991_v53 = vld [vmem:[%s5382_s4 + $0x118] sm:$0xff] }
  0x3c   :  { %3623 = vmatprep.subr.mxu0 %v442_v55 }
  0x3d   :  { %3624 = vmatpush3.msra.mxu0 %v442_v55  ;;  %v2990_v55 = vld [vmem:[%s5382_s4 + $0x110] sm:$0xff] }
  0x3e   :  { %3625 = vmatprep.subr.mxu0 %v441_v57 }
  0x3f   :  { %3626 = vmatpush3.msra.mxu0 %v441_v57  ;;  %v2989_v57 = vld [vmem:[%s5382_s4 + $0x108] sm:$0xff] }
  0x40   :  { %3661 = vmatprep.subr.mxu0 %v2965_v59 }
  0xd3   :  { %v3529_v60 = vpop.f32.mrf.mxu0 }
  0xd4   :  { %v149_v0 = vadd.f32 %v3529_v60, %v2908_v61  ;;  %v2971_v60 = vld [vmem:[%s5381_s3 + $0xf8] sm:$0xff] }
  0xd5   :  { %v139_v62 = vpop.f32.mrf.mxu0  ;;  %v3548_v63 = vpop.f32.mrf.mxu1 }
  0xd6   :  { %v148_v1 = vadd.f32 %v2908_v61, %v139_v62  ;;  %v243_v3 = vadd.f32 %v3548_v63, %v149_v0  ;;  %v2987_v61 = vld [vmem:[%s5382_s4 + $0xf8] sm:$0xff]  ;;  %v2970_v62 = vld [vmem:[%s5381_s3 + $0xf0] sm:$0xff]  ;;  %v2969_v0 = vld [vmem:[%s5381_s3 + $0xe8] sm:$0xff] }
  0xd7   :  { %v233_v2 = vpop.f32.mrf.mxu1  ;;  %v2986_v63 = vld [vmem:[%s5382_s4 + $0xf0] sm:$0xff] }
  0xd8   :  { %v242_v5 = vadd.f32 %v233_v2, %v148_v1  ;;  %v2985_v1 = vld [vmem:[%s5382_s4 + $0xe8] sm:$0xff]  ;;  %v2968_v2 = vld [vmem:[%s5381_s3 + $0xe0] sm:$0xff] }
  0xe4   :  { %v3567_v4 = vpop.f32.mrf.mxu0 }
  0xe5   :  { %v337_v6 = vadd.f32 %v3567_v4, %v243_v3  ;;  %v2984_v3 = vld [vmem:[%s5382_s4 + $0xe0] sm:$0xff] }
  0xe6   :  { %v327_v7 = vpop.f32.mrf.mxu0 }
  0xe7   :  { %341 = vst.msk [vmem:[#allocation2 + $0x8] sm:$0x3f] %vm340_vm1, %v337_v6  ;;  %v336_v8 = vadd.f32 %v327_v7, %v242_v5  ;;  %v4219_v5 = vmov 0.0   ;;  %v931_v6 = vld [vmem:[%s5384_s6 + $0x28] sm:$0xff] }
  0xe8   :  { %v3013_v7 = vld [vmem:[%s5384_s6 + $0x88] sm:$0xff] }
  0xe9   :  { %339 = vst.msk [vmem:[#allocation2] sm:$0xff] %vm338_vm2, %v336_v8  ;;  %v930_v8 = vld [vmem:[%s5384_s6 + $0x20] sm:$0xff] }
  0xee   :  { %v343_v10 = vld [vmem:[#allocation2 + $0x8] sm:$0xf] }
  0xef   :  { %v533_v40 = vld [vmem:[#allocation2 + $0x9] sm:$0xf] }
  0xf0   :  { %v342_v9 = vld [vmem:[#allocation2] sm:$0xff]  ;;  %v725_v4 = vld [vmem:[#allocation2 + $0xa] sm:$0xf] }
  0xf1   :  { %3596 = vmatprep.mubr.msk.f32.mxu1 %vm338_vm2, %v342_v9  ;;  %3627 = vmatprep.mubr.msk.f32.mxu0 %vm338_vm2, %v342_v9  ;;  %v532_v13 = vld [vmem:[#allocation2 + $0x1] sm:$0xff] }
  0xf2   :  { %3597 = vmatmul.mubr.msk.f32.vlgmr.msra.gmra.mxu1 %vm338_vm2, %v343_v10  ;;  %3628 = vmatmul.mubr.msk.f32.vlgmr.msra.gmra.mxu0 %vm338_vm2, %v343_v10  ;;  %v724_v41 = vld [vmem:[#allocation2 + $0x2] sm:$0xff]  ;;  %v929_v10 = vld [vmem:[%s5384_s6 + $0x18] sm:$0xff] }
  0xf3   :  { %3631 = vmatpush3.msra.mxu1 %v2949_v58  ;;  %3662 = vmatpush3.msra.mxu0 %v2965_v59  ;;  %v2972_v58 = vld [vmem:[%s5381_s3 + $0x100] sm:$0xff] }
  0xf4   :  { %3632 = vmatprep.subr.mxu1 %v2948_v11  ;;  %3658 = vmatprep.mubr.msk.f32.mxu1 %vm338_vm2, %v532_v13  ;;  %v2988_v59 = vld [vmem:[%s5382_s4 + $0x100] sm:$0xff] }
  0xf5   :  { %3663 = vmatprep.subr.mxu0 %v2964_v12  ;;  %3689 = vmatprep.mubr.msk.f32.mxu0 %vm338_vm2, %v532_v13  ;;  %v3012_v9 = vld [vmem:[%s5384_s6 + $0x80] sm:$0xff]  ;;  %v3010_v13 = vld [vmem:[%s5384_s6 + $0x70] sm:$0xff] }
  0xf6   :  { %3633 = vmatpush3.msra.mxu1 %v2948_v11  ;;  %3664 = vmatpush3.msra.mxu0 %v2964_v12  ;;  %v3011_v11 = vld [vmem:[%s5384_s6 + $0x78] sm:$0xff]  ;;  %v928_v12 = vld [vmem:[%s5384_s6 + $0x10] sm:$0xff] }
  0xf7   :  { %3634 = vmatprep.subr.mxu1 %v2947_v14  ;;  %3665 = vmatprep.subr.mxu0 %v2963_v15 }
  0xf8   :  { %3635 = vmatpush3.msra.mxu1 %v2947_v14  ;;  %3666 = vmatpush3.msra.mxu0 %v2963_v15  ;;  %v927_v14 = vld [vmem:[%s5384_s6 + $0x8] sm:$0xff] }
  0xf9   :  { %3636 = vmatprep.subr.mxu1 %v2946_v16  ;;  %3667 = vmatprep.subr.mxu0 %v2962_v17  ;;  %v3009_v15 = vld [vmem:[%s5384_s6 + $0x68] sm:$0xff] }
  0xfa   :  { %3637 = vmatpush3.msra.mxu1 %v2946_v16  ;;  %3668 = vmatpush3.msra.mxu0 %v2962_v17  ;;  %v926_v16 = vld [vmem:[%s5384_s6] sm:$0xff] }
  0xfb   :  { %3638 = vmatprep.subr.mxu1 %v2945_v18  ;;  %3669 = vmatprep.subr.mxu0 %v2961_v19  ;;  %v3008_v17 = vld [vmem:[%s5384_s6 + $0x60] sm:$0xff] }
  0xfc   :  { %3639 = vmatpush3.msra.mxu1 %v2945_v18  ;;  %3670 = vmatpush3.msra.mxu0 %v2961_v19 }
  0xfd   :  { %3640 = vmatprep.subr.mxu1 %v2944_v20  ;;  %3671 = vmatprep.subr.mxu0 %v2960_v21 }
  0xfe   :  { %3641 = vmatpush3.msra.mxu1 %v2944_v20  ;;  %3672 = vmatpush3.msra.mxu0 %v2960_v21 }
  0xff   :  { %3642 = vmatprep.subr.mxu1 %v2943_v22  ;;  %3673 = vmatprep.subr.mxu0 %v2959_v23 }
 0x100   :  { %3643 = vmatpush3.msra.mxu1 %v2943_v22  ;;  %3674 = vmatpush3.msra.mxu0 %v2959_v23  ;;  %v2909_v22 = vld [vmem:[%s5383_s5] ss:$0 sm:$0xff] }
 0x101   :  { %3644 = vmatprep.subr.mxu1 %v2942_v24  ;;  %3675 = vmatprep.subr.mxu0 %v2958_v25 }
 0x102   :  { %3645 = vmatpush3.msra.mxu1 %v2942_v24  ;;  %3676 = vmatpush3.msra.mxu0 %v2958_v25 }
 0x103   :  { %3646 = vmatprep.subr.mxu1 %v2941_v26  ;;  %3677 = vmatprep.subr.mxu0 %v2957_v27 }
 0x104   :  { %3647 = vmatpush3.msra.mxu1 %v2941_v26  ;;  %3678 = vmatpush3.msra.mxu0 %v2957_v27 }
 0x105   :  { %3648 = vmatprep.subr.mxu1 %v2940_v28  ;;  %3679 = vmatprep.subr.mxu0 %v2956_v29 }
 0x106   :  { %3649 = vmatpush3.msra.mxu1 %v2940_v28  ;;  %3680 = vmatpush3.msra.mxu0 %v2956_v29 }
 0x107   :  { %3650 = vmatprep.subr.mxu1 %v2939_v30  ;;  %3681 = vmatprep.subr.mxu0 %v2955_v31 }
 0x108   :  { %3651 = vmatpush3.msra.mxu1 %v2939_v30  ;;  %3682 = vmatpush3.msra.mxu0 %v2955_v31 }
 0x109   :  { %3652 = vmatprep.subr.mxu1 %v2938_v32  ;;  %3683 = vmatprep.subr.mxu0 %v2954_v33 }
 0x10a   :  { %3653 = vmatpush3.msra.mxu1 %v2938_v32  ;;  %3684 = vmatpush3.msra.mxu0 %v2954_v33 }
 0x10b   :  { %3654 = vmatprep.subr.mxu1 %v2937_v34  ;;  %3685 = vmatprep.subr.mxu0 %v2953_v35 }
 0x10c   :  { %3655 = vmatpush3.msra.mxu1 %v2937_v34  ;;  %3686 = vmatpush3.msra.mxu0 %v2953_v35 }
 0x10d   :  { %3656 = vmatprep.subr.mxu1 %v2936_v36  ;;  %3687 = vmatprep.subr.mxu0 %v2952_v37 }
 0x10e   :  { %3657 = vmatpush3.msra.mxu1 %v2936_v36  ;;  %3688 = vmatpush3.msra.mxu0 %v2952_v37 }
 0x10f   :  { %3659 = vmatmul.mubr.msk.f32.vlgmr.msra.gmra.mxu1 %vm338_vm2, %v533_v40  ;;  %3690 = vmatmul.mubr.msk.f32.vlgmr.msra.gmra.mxu0 %vm338_vm2, %v533_v40 }
 0x110   :  { %3692 = vmatprep.subr.mxu1 %v2981_v38  ;;  %3723 = vmatprep.subr.mxu0 %v2997_v39 }
 0x111   :  { %3693 = vmatpush3.msra.mxu1 %v2981_v38  ;;  %3720 = vmatprep.mubr.msk.f32.mxu1 %vm338_vm2, %v724_v41 }
 0x112   :  { %3724 = vmatpush3.msra.mxu0 %v2997_v39  ;;  %3751 = vmatprep.mubr.msk.f32.mxu0 %vm338_vm2, %v724_v41 }
 0x113   :  { %3694 = vmatprep.subr.mxu1 %v2980_v42  ;;  %3725 = vmatprep.subr.mxu0 %v2996_v43 }
 0x114   :  { %3695 = vmatpush3.msra.mxu1 %v2980_v42  ;;  %3726 = vmatpush3.msra.mxu0 %v2996_v43 }
 0x115   :  { %3696 = vmatprep.subr.mxu1 %v2979_v44  ;;  %3727 = vmatprep.subr.mxu0 %v2995_v45 }
 0x116   :  { %3697 = vmatpush3.msra.mxu1 %v2979_v44  ;;  %3728 = vmatpush3.msra.mxu0 %v2995_v45 }
 0x117   :  { %3698 = vmatprep.subr.mxu1 %v2978_v46  ;;  %3729 = vmatprep.subr.mxu0 %v2994_v47 }
 0x118   :  { %3699 = vmatpush3.msra.mxu1 %v2978_v46  ;;  %3730 = vmatpush3.msra.mxu0 %v2994_v47 }
 0x119   :  { %3700 = vmatprep.subr.mxu1 %v2977_v48  ;;  %3731 = vmatprep.subr.mxu0 %v2993_v49 }
 0x11a   :  { %3701 = vmatpush3.msra.mxu1 %v2977_v48  ;;  %3732 = vmatpush3.msra.mxu0 %v2993_v49 }
 0x11b   :  { %3702 = vmatprep.subr.mxu1 %v2976_v50  ;;  %3733 = vmatprep.subr.mxu0 %v2992_v51 }
 0x11c   :  { %3703 = vmatpush3.msra.mxu1 %v2976_v50  ;;  %3734 = vmatpush3.msra.mxu0 %v2992_v51 }
 0x11d   :  { %3704 = vmatprep.subr.mxu1 %v2975_v52  ;;  %3735 = vmatprep.subr.mxu0 %v2991_v53 }
 0x11e   :  { %3705 = vmatpush3.msra.mxu1 %v2975_v52  ;;  %3736 = vmatpush3.msra.mxu0 %v2991_v53  ;;  %v3006_v52 = vld [vmem:[%s5384_s6 + $0x58] sm:$0xff] }
 0x11f   :  { %3706 = vmatprep.subr.mxu1 %v2974_v54  ;;  %3737 = vmatprep.subr.mxu0 %v2990_v55 }
 0x120   :  { %3707 = vmatpush3.msra.mxu1 %v2974_v54  ;;  %3738 = vmatpush3.msra.mxu0 %v2990_v55  ;;  %v3027_v54 = vld [vmem:[%s5384_s6 + $0xe8] sm:$0xff]  ;;  %v3005_v55 = vld [vmem:[%s5384_s6 + $0x50] sm:$0xff] }
 0x121   :  { %3708 = vmatprep.subr.mxu1 %v2973_v56  ;;  %3739 = vmatprep.subr.mxu0 %v2989_v57 }
 0x122   :  { %3709 = vmatpush3.msra.mxu1 %v2973_v56  ;;  %3740 = vmatpush3.msra.mxu0 %v2989_v57  ;;  %v3026_v56 = vld [vmem:[%s5384_s6 + $0xe0] sm:$0xff]  ;;  %v3004_v57 = vld [vmem:[%s5384_s6 + $0x48] sm:$0xff] }
 0x123   :  { %3710 = vmatprep.subr.mxu1 %v2972_v58  ;;  %3741 = vmatprep.subr.mxu0 %v2988_v59 }
 0x124   :  { %3711 = vmatpush3.msra.mxu1 %v2972_v58  ;;  %3742 = vmatpush3.msra.mxu0 %v2988_v59  ;;  %v3025_v58 = vld [vmem:[%s5384_s6 + $0xd8] sm:$0xff]  ;;  %v3003_v59 = vld [vmem:[%s5384_s6 + $0x40] sm:$0xff] }
 0x125   :  { %3712 = vmatprep.subr.mxu1 %v2971_v60  ;;  %3743 = vmatprep.subr.mxu0 %v2987_v61 }
 0x126   :  { %3713 = vmatpush3.msra.mxu1 %v2971_v60  ;;  %3744 = vmatpush3.msra.mxu0 %v2987_v61 }
 0x127   :  { %3714 = vmatprep.subr.mxu1 %v2970_v62  ;;  %3745 = vmatprep.subr.mxu0 %v2986_v63 }
 0x128   :  { %3715 = vmatpush3.msra.mxu1 %v2970_v62  ;;  %3746 = vmatpush3.msra.mxu0 %v2986_v63  ;;  %v3024_v62 = vld [vmem:[%s5384_s6 + $0xd0] sm:$0xff] }
 0x129   :  { %3716 = vmatprep.subr.mxu1 %v2969_v0  ;;  %3747 = vmatprep.subr.mxu0 %v2985_v1 }
 0x12a   :  { %3717 = vmatpush3.msra.mxu1 %v2969_v0  ;;  %3748 = vmatpush3.msra.mxu0 %v2985_v1  ;;  %v3002_v1 = vld [vmem:[%s5384_s6 + $0x38] sm:$0xff] }
 0x12b   :  { %3718 = vmatprep.subr.mxu1 %v2968_v2  ;;  %3749 = vmatprep.subr.mxu0 %v2984_v3 }
 0x12c   :  { %3719 = vmatpush3.msra.mxu1 %v2968_v2  ;;  %3750 = vmatpush3.msra.mxu0 %v2984_v3  ;;  %v3023_v2 = vld [vmem:[%s5384_s6 + $0xc8] sm:$0xff] }
 0x12d   :  { %3721 = vmatmul.mubr.msk.f32.vlgmr.msra.gmra.mxu1 %vm338_vm2, %v725_v4  ;;  %3752 = vmatmul.mubr.msk.f32.vlgmr.msra.gmra.mxu0 %vm338_vm2, %v725_v4  ;;  %v3001_v4 = vld [vmem:[%s5384_s6 + $0x30] sm:$0xff] }
 0x12e   :  { %3754 = vmatprep.subr.mxu1 %v4219_v5  ;;  %3784 = vmatprep.subr.mxu0 %v4219_v5 }
 0x12f   :  { %3755 = vmatpush3.msra.mxu1 %v931_v6  ;;  %3785 = vmatpush3.msra.mxu0 %v3013_v7  ;;  %v3022_v7 = vld [vmem:[%s5384_s6 + $0xc0] sm:$0xff] }
 0x130   :  { %3756 = vmatprep.subr.mxu1 %v4219_v5  ;;  %3786 = vmatprep.subr.mxu0 %v4219_v5 }
 0x131   :  { %3757 = vmatpush3.msra.mxu1 %v930_v8  ;;  %3787 = vmatpush3.msra.mxu0 %v3012_v9 }
 0x132   :  { %3758 = vmatprep.subr.mxu1 %v4219_v5  ;;  %3788 = vmatprep.subr.mxu0 %v4219_v5 }
 0x133   :  { %3759 = vmatpush3.msra.mxu1 %v929_v10  ;;  %3789 = vmatpush3.msra.mxu0 %v3011_v11  ;;  %v3020_v10 = vld [vmem:[%s5384_s6 + $0xb8] sm:$0xff] }
 0x134   :  { %3760 = vmatprep.subr.mxu1 %v4219_v5  ;;  %3790 = vmatprep.subr.mxu0 %v4219_v5  ;;  %v1441_v11 = vld [vmem:[%s5379_s1 + $0x38] sm:$0xff] }
 0x135   :  { %3761 = vmatpush3.msra.mxu1 %v928_v12  ;;  %3791 = vmatpush3.msra.mxu0 %v3010_v13  ;;  %v3019_v12 = vld [vmem:[%s5384_s6 + $0xb0] sm:$0xff] }
 0x136   :  { %3762 = vmatprep.subr.mxu1 %v4219_v5  ;;  %3792 = vmatprep.subr.mxu0 %v4219_v5  ;;  %v1440_v13 = vld [vmem:[%s5379_s1 + $0x30] sm:$0xff] }
 0x137   :  { %3763 = vmatpush3.msra.mxu1 %v927_v14  ;;  %3793 = vmatpush3.msra.mxu0 %v3009_v15  ;;  %v3018_v14 = vld [vmem:[%s5384_s6 + $0xa8] sm:$0xff] }
 0x138   :  { %3764 = vmatprep.subr.mxu1 %v4219_v5  ;;  %3794 = vmatprep.subr.mxu0 %v4219_v5 }
 0x139   :  { %3765 = vmatpush3.msra.mxu1 %v926_v16  ;;  %3795 = vmatpush3.msra.mxu0 %v3008_v17  ;;  %v1439_v17 = vld [vmem:[%s5379_s1 + $0x28] sm:$0xff] }
 0x13a   :  { %3766 = vmatprep.mubr.msk.f32.mxu1 %vm4220_vm3, %v4219_v5  ;;  %3769 = vmatprep.subr.mxu1 %v4219_v5 }
 0x13b   :  { %3796 = vmatprep.mubr.msk.f32.mxu0 %vm4220_vm3, %v4219_v5  ;;  %3814 = vmatprep.subr.mxu0 %v4219_v5 }
 0x1b2   :  { %v3598_v18 = vpop.f32.mrf.mxu1  ;;  %v3629_v19 = vpop.f32.mrf.mxu0 }
 0x1b3   :  { %v440_v25 = vadd.f32 %v3598_v18, %v2909_v22  ;;  %v531_v26 = vadd.f32 %v3629_v19, %v2909_v22  ;;  %v3017_v18 = vld [vmem:[%s5384_s6 + $0xa0] sm:$0xff] }
 0x1b4   :  { %v430_v20 = vpop.f32.mrf.mxu1  ;;  %v521_v21 = vpop.f32.mrf.mxu0  ;;  %v1438_v19 = vld [vmem:[%s5379_s1 + $0x20] sm:$0xff] }
 0x1b5   :  { %v439_v29 = vadd.f32 %v2909_v22, %v430_v20  ;;  %v530_v30 = vadd.f32 %v2909_v22, %v521_v21  ;;  %v3016_v20 = vld [vmem:[%s5384_s6 + $0x98] sm:$0xff] }
 0x1b6   :  { %v1437_v22 = vld [vmem:[%s5379_s1 + $0x18] sm:$0xff] }
 0x1cf   :  { %v3660_v23 = vpop.f32.mrf.mxu1  ;;  %v3691_v24 = vpop.f32.mrf.mxu0 }
 0x1d0   :  { %v631_v31 = vadd.f32 %v3660_v23, %v440_v25  ;;  %v723_v32 = vadd.f32 %v3691_v24, %v531_v26  ;;  %v3015_v23 = vld [vmem:[%s5384_s6 + $0x90] sm:$0xff]  ;;  %v3034_v25 = vld [vmem:[%s5384_s6 + $0x118] sm:$0xff] }
 0x1d1   :  { %v621_v27 = vpop.f32.mrf.mxu1  ;;  %v713_v28 = vpop.f32.mrf.mxu0  ;;  %v1436_v26 = vld [vmem:[%s5379_s1 + $0x10] sm:$0xff] }
 0x1d2   :  { %v630_v35 = vadd.f32 %v621_v27, %v439_v29  ;;  %v722_v36 = vadd.f32 %v713_v28, %v530_v30  ;;  %v3033_v27 = vld [vmem:[%s5384_s6 + $0x110] sm:$0xff]  ;;  %v1435_v28 = vld [vmem:[%s5379_s1 + $0x8] sm:$0xff]  ;;  %v1434_v30 = vld [vmem:[%s5379_s1] sm:$0xff] }
 0x1d3   :  { %v3032_v29 = vld [vmem:[%s5384_s6 + $0x108] sm:$0xff] }
 0x1ed   :  { %v3722_v33 = vpop.f32.mrf.mxu1  ;;  %v3753_v34 = vpop.f32.mrf.mxu0 }
 0x1ee   :  { %v823_v37 = vadd.f32 %v3722_v33, %v631_v31  ;;  %v915_v38 = vadd.f32 %v3753_v34, %v723_v32  ;;  %v3031_v33 = vld [vmem:[%s5384_s6 + $0x100] sm:$0xff]  ;;  %v3036_v34 = vld [vmem:[%s5378_s0 + $0x10] sm:$0xff] }
 0x1ef   :  { %v813_v39 = vpop.f32.mrf.mxu1  ;;  %v905_v40 = vpop.f32.mrf.mxu0 }
 0x1f0   :  { %v917_v41 = vmax.f32 %v823_v37, %v915_v38  ;;  %v822_v42 = vadd.f32 %v813_v39, %v630_v35  ;;  %v914_v43 = vadd.f32 %v905_v40, %v722_v36  ;;  %v3030_v35 = vld [vmem:[%s5384_s6 + $0xf8] sm:$0xff]  ;;  %v3029_v39 = vld [vmem:[%s5384_s6 + $0xf0] sm:$0xff] }
 0x1f1   :  { %v3061_v37 = vld [vmem:[%s5379_s1 + $0xb8] sm:$0xff] }
 0x1f2   :  { %921 = vst.msk [vmem:[#allocation3 + $0x8] sm:$0xf] %vm920_vm4, %v917_v41  ;;  %v916_v44 = vmax.f32 %v822_v42, %v914_v43  ;;  %v3037_v38 = vld [vmem:[%s5378_s0 + $0x18] sm:$0x3f]  ;;  %v3060_v42 = vld [vmem:[%s5379_s1 + $0xb0] sm:$0xff] }
 0x1f3   :  { %v3049_v40 = vld [vmem:[%s5379_s1 + $0x78] sm:$0xff]  ;;  %v3048_v43 = vld [vmem:[%s5379_s1 + $0x70] sm:$0xff] }
 0x1f4   :  { %919 = vst.msk [vmem:[#allocation3] sm:$0xff] %vm918_vm5, %v916_v44  ;;  %v3059_v44 = vld [vmem:[%s5379_s1 + $0xa8] sm:$0xff] }
 0x1f9   :  { %v1261_v63 = vld [vmem:[#allocation3 + $0x8] sm:$0x1]  ;;  %v1262_v0 = vld [vmem:[#allocation3 + $0x9] sm:$0x1]  ;;  %v1346_v31 = vld [vmem:[#allocation3 + $0xa] sm:$0x1] }
 0x1fa   :  { %v1263_v6 = vmax.f32 %v1261_v63, %v1262_v0  ;;  %v1347_v32 = vld [vmem:[#allocation3 + $0xb] sm:$0x1]  ;;  %v1824_v63 = vld [vmem:[%s5382_s4 + $0x60] sm:$0xff] }
 0x1fb   :  { %v922_v45 = vld [vmem:[#allocation3] sm:$0x1]  ;;  %v923_v46 = vld [vmem:[#allocation3 + $0x1] sm:$0x1]  ;;  %v1091_v47 = vld [vmem:[#allocation3 + $0x4] sm:$0x1]  ;;  %v1348_v36 = vmax.f32 %v1346_v31, %v1347_v32 }
 0x1fc   :  { %v924_v48 = vmax.f32 %v922_v45, %v923_v46  ;;  %v1092_v49 = vld [vmem:[#allocation3 + $0x5] sm:$0x1]  ;;  %v1006_v60 = vld [vmem:[#allocation3 + $0x2] sm:$0x1]  ;;  %v1007_v61 = vld [vmem:[#allocation3 + $0x3] sm:$0x1] }
 0x1fd   :  { %v1093_v50 = vmax.f32 %v1091_v47, %v1092_v49  ;;  %v1008_v3 = vmax.f32 %v1006_v60, %v1007_v61  ;;  %v1264_v9 = vmax.f32 %v1263_v6, 0.0  ;;  %v1176_v15 = vld [vmem:[#allocation3 + $0x6] sm:$0x1]  ;;  %v1177_v16 = vld [vmem:[#allocation3 + $0x7] sm:$0x1]  ;;  %v1349_v41 = vmax.f32 %v1348_v36, 0.0 }
 0x1fe   :  { %v925_v51 = vmax.f32 %v924_v48, 0.0  ;;  %v1178_v21 = vmax.f32 %v1176_v15, %v1177_v16  ;;  %v3047_v45 = vld [vmem:[%s5379_s1 + $0x68] sm:$0xff]  ;;  %v3058_v46 = vld [vmem:[%s5379_s1 + $0xa0] sm:$0xff]  ;;  %v3057_v48 = vld [vmem:[%s5379_s1 + $0x98] sm:$0xff] }
 0x1ff   :  { %v1094_v53 = vmax.f32 %v1093_v50, 0.0  ;;  %v1009_v8 = vmax.f32 %v1008_v3, 0.0  ;;  %v3046_v47 = vld [vmem:[%s5379_s1 + $0x60] sm:$0xff]  ;;  %v3045_v49 = vld [vmem:[%s5379_s1 + $0x58] sm:$0xff]  ;;  %v3056_v50 = vld [vmem:[%s5379_s1 + $0x90] sm:$0xff] }
 0x200   :  { %3767 = vmatmul.mubr.msk.f32.vlgmr.msra.gmra.mxu1 %vm918_vm5, %v925_v51  ;;  %v1179_v24 = vmax.f32 %v1178_v21, 0.0  ;;  %v3044_v51 = vld [vmem:[%s5379_s1 + $0x50] sm:$0xff]  ;;  %v1728_v60 = vld [vmem:[%s5381_s3 + $0x68] sm:$0xff]  ;;  %v1726_v0 = vld [vmem:[%s5381_s3 + $0x58] sm:$0xff] }
 0x201   :  { %3770 = vmatpush3.msra.mxu1 %v3006_v52  ;;  %3797 = vmatmul.mubr.msk.f32.vlgmr.msra.gmra.mxu0 %vm918_vm5, %v1094_v53  ;;  %v3055_v52 = vld [vmem:[%s5379_s1 + $0x88] sm:$0xff]  ;;  %v1822_v3 = vld [vmem:[%s5382_s4 + $0x50] sm:$0xff]  ;;  %v1719_v15 = vld [vmem:[%s5381_s3 + $0x20] sm:$0xff] }
 0x202   :  { %3815 = vmatpush3.msra.mxu0 %v3027_v54  ;;  %3771 = vmatprep.subr.mxu1 %v4219_v5  ;;  %v3043_v53 = vld [vmem:[%s5379_s1 + $0x48] sm:$0xff]  ;;  %v3054_v54 = vld [vmem:[%s5379_s1 + $0x80] sm:$0xff] }
 0x203   :  { %3816 = vmatprep.subr.mxu0 %v4219_v5  ;;  %3772 = vmatpush3.msra.mxu1 %v3005_v55  ;;  %v3042_v55 = vld [vmem:[%s5379_s1 + $0x40] sm:$0xff]  ;;  %v1825_v61 = vld [vmem:[%s5382_s4 + $0x68] sm:$0xff] }
 0x204   :  { %3817 = vmatpush3.msra.mxu0 %v3026_v56  ;;  %3773 = vmatprep.subr.mxu1 %v4219_v5  ;;  %v3040_v56 = vld [vmem:[%s5378_s0 + $0x11] sm:$0xff]  ;;  %v1821_v6 = vld [vmem:[%s5382_s4 + $0x48] sm:$0xff]  ;;  %v1816_v16 = vld [vmem:[%s5382_s4 + $0x20] sm:$0xff] }
 0x205   :  { %3818 = vmatprep.subr.mxu0 %v4219_v5  ;;  %3774 = vmatpush3.msra.mxu1 %v3004_v57  ;;  %v3052_v57 = vld [vmem:[%s5378_s0 + $0x12] sm:$0xff]  ;;  %v1716_v21 = vld [vmem:[%s5381_s3 + $0x8] sm:$0xff]  ;;  %v4998_v31 = vld [vmem:[%s5385_s7] sm:$0x1] }
 0x206   :  { %3819 = vmatpush3.msra.mxu0 %v3025_v58  ;;  %3775 = vmatprep.subr.mxu1 %v4219_v5  ;;  %v3041_v58 = vld [vmem:[%s5378_s0 + $0x19] sm:$0x3f] }
 0x207   :  { %3820 = vmatprep.subr.mxu0 %v4219_v5  ;;  %3776 = vmatpush3.msra.mxu1 %v3003_v59  ;;  %v3053_v59 = vld [vmem:[%s5378_s0 + $0x1a] sm:$0x3f] }
 0x208   :  { %3821 = vmatpush3.msra.mxu0 %v3024_v62  ;;  %3777 = vmatprep.subr.mxu1 %v4219_v5  ;;  %v1727_v62 = vld [vmem:[%s5381_s3 + $0x60] sm:$0xff] }
 0x209   :  { %3822 = vmatprep.subr.mxu0 %v4219_v5  ;;  %3778 = vmatpush3.msra.mxu1 %v3002_v1  ;;  %v1823_v1 = vld [vmem:[%s5382_s4 + $0x58] sm:$0xff] }
 0x20a   :  { %3823 = vmatpush3.msra.mxu0 %v3023_v2  ;;  %3779 = vmatprep.subr.mxu1 %v4219_v5  ;;  %v1725_v2 = vld [vmem:[%s5381_s3 + $0x50] sm:$0xff] }
 0x20b   :  { %3824 = vmatprep.subr.mxu0 %v4219_v5  ;;  %3780 = vmatpush3.msra.mxu1 %v3001_v4  ;;  %v1724_v4 = vld [vmem:[%s5381_s3 + $0x48] sm:$0xff] }
 0x20c   :  { %3781 = vmatprep.mubr.msk.f32.mxu1 %vm4220_vm3, %v4219_v5  ;;  %3825 = vmatpush3.msra.mxu0 %v3022_v7  ;;  %v1723_v7 = vld [vmem:[%s5381_s3 + $0x40] sm:$0xff] }
 0x20d   :  { %3826 = vmatprep.mubr.msk.f32.mxu0 %vm4220_vm3, %v4219_v5  ;;  %3782 = vmatmul.mubr.msk.f32.vlgmr.msra.gmra.mxu1 %vm918_vm5, %v1009_v8  ;;  %v1820_v8 = vld [vmem:[%s5382_s4 + $0x40] sm:$0xff] }
 0x20e   :  { %3799 = vmatprep.subr.mxu1 %v4219_v5  ;;  %3827 = vmatmul.mubr.msk.f32.vlgmr.msra.gmra.mxu0 %vm918_vm5, %v1264_v9  ;;  %v1722_v9 = vld [vmem:[%s5381_s3 + $0x38] sm:$0xff] }
 0x20f   :  { %3800 = vmatpush3.msra.mxu1 %v3020_v10  ;;  %3844 = vmatprep.subr.mxu0 %v1441_v11  ;;  %v1819_v10 = vld [vmem:[%s5382_s4 + $0x38] sm:$0xff] }
 0x210   :  { %3801 = vmatprep.subr.mxu1 %v4219_v5  ;;  %3845 = vmatpush3.msra.mxu0 %v1441_v11  ;;  %v1721_v11 = vld [vmem:[%s5381_s3 + $0x30] sm:$0xff] }
 0x211   :  { %3802 = vmatpush3.msra.mxu1 %v3019_v12  ;;  %3846 = vmatprep.subr.mxu0 %v1440_v13  ;;  %v1818_v12 = vld [vmem:[%s5382_s4 + $0x30] sm:$0xff] }
 0x212   :  { %3803 = vmatprep.subr.mxu1 %v4219_v5  ;;  %3811 = vmatprep.mubr.msk.f32.mxu1 %vm4220_vm3, %v4219_v5 }
 0x213   :  { %3804 = vmatpush3.msra.mxu1 %v3018_v14  ;;  %3847 = vmatpush3.msra.mxu0 %v1440_v13  ;;  %v1720_v13 = vld [vmem:[%s5381_s3 + $0x28] sm:$0xff] }
 0x214   :  { %3805 = vmatprep.subr.mxu1 %v4219_v5  ;;  %3848 = vmatprep.subr.mxu0 %v1439_v17  ;;  %v1817_v14 = vld [vmem:[%s5382_s4 + $0x28] sm:$0xff] }
 0x215   :  { %3806 = vmatpush3.msra.mxu1 %v3017_v18  ;;  %3849 = vmatpush3.msra.mxu0 %v1439_v17  ;;  %v1718_v17 = vld [vmem:[%s5381_s3 + $0x18] sm:$0xff] }
 0x216   :  { %3807 = vmatprep.subr.mxu1 %v4219_v5  ;;  %3850 = vmatprep.subr.mxu0 %v1438_v19  ;;  %v1815_v18 = vld [vmem:[%s5382_s4 + $0x18] sm:$0xff] }
 0x217   :  { %3808 = vmatpush3.msra.mxu1 %v3016_v20  ;;  %3851 = vmatpush3.msra.mxu0 %v1438_v19  ;;  %v1717_v19 = vld [vmem:[%s5381_s3 + $0x10] sm:$0xff] }
 0x218   :  { %3809 = vmatprep.subr.mxu1 %v4219_v5  ;;  %3852 = vmatprep.subr.mxu0 %v1437_v22  ;;  %v1814_v20 = vld [vmem:[%s5382_s4 + $0x10] sm:$0xff] }
 0x219   :  { %3810 = vmatpush3.msra.mxu1 %v3015_v23  ;;  %3853 = vmatpush3.msra.mxu0 %v1437_v22  ;;  %v1813_v22 = vld [vmem:[%s5382_s4 + $0x8] sm:$0xff]  ;;  %v1715_v23 = vld [vmem:[%s5381_s3] sm:$0xff] }
 0x21a   :  { %3812 = vmatmul.mubr.msk.f32.vlgmr.msra.gmra.mxu1 %vm918_vm5, %v1179_v24  ;;  %3829 = vmatprep.subr.mxu1 %v4219_v5  ;;  %v1812_v24 = vld [vmem:[%s5382_s4] sm:$0xff] }
 0x21b   :  { %3830 = vmatpush3.msra.mxu1 %v3034_v25  ;;  %3854 = vmatprep.subr.mxu0 %v1436_v26  ;;  %v3081_v25 = vld [vmem:[%s5381_s3 + $0xd8] sm:$0xff] }
 0x21c   :  { %3831 = vmatprep.subr.mxu1 %v4219_v5  ;;  %3855 = vmatpush3.msra.mxu0 %v1436_v26  ;;  %v3097_v26 = vld [vmem:[%s5382_s4 + $0xd8] sm:$0xff] }
 0x21d   :  { %3832 = vmatpush3.msra.mxu1 %v3033_v27  ;;  %3856 = vmatprep.subr.mxu0 %v1435_v28 }
 0x21e   :  { %3833 = vmatprep.subr.mxu1 %v4219_v5  ;;  %3857 = vmatpush3.msra.mxu0 %v1435_v28 }
 0x21f   :  { %3834 = vmatpush3.msra.mxu1 %v3032_v29  ;;  %3858 = vmatprep.subr.mxu0 %v1434_v30 }
 0x220   :  { %3835 = vmatprep.subr.mxu1 %v4219_v5  ;;  %3841 = vmatprep.mubr.msk.f32.mxu1 %vm4220_vm3, %v4219_v5 }
 0x221   :  { %3836 = vmatpush3.msra.mxu1 %v3031_v33  ;;  %3859 = vmatpush3.msra.mxu0 %v1434_v30 }
 0x222   :  { %3837 = vmatprep.subr.mxu1 %v4219_v5  ;;  %3860 = vmatprep.mubr.msk.f32.mxu0 %vm66_vm0, %v3036_v34 }
 0x223   :  { %3838 = vmatpush3.msra.mxu1 %v3030_v35  ;;  %3882 = vmatprep.subr.mxu0 %v3061_v37 }
 0x224   :  { %3839 = vmatprep.subr.mxu1 %v4219_v5  ;;  %3861 = vmatmul.mubr.msk.f32.vlgmr.msra.gmra.mxu0 %vm66_vm0, %v3037_v38 }
 0x225   :  { %3840 = vmatpush3.msra.mxu1 %v3029_v39  ;;  %3883 = vmatpush3.msra.mxu0 %v3061_v37 }
 0x226   :  { %3842 = vmatmul.mubr.msk.f32.vlgmr.msra.gmra.mxu1 %vm918_vm5, %v1349_v41  ;;  %3863 = vmatprep.subr.mxu1 %v3049_v40 }
 0x227   :  { %3864 = vmatpush3.msra.mxu1 %v3049_v40  ;;  %3884 = vmatprep.subr.mxu0 %v3060_v42 }
 0x228   :  { %3865 = vmatprep.subr.mxu1 %v3048_v43  ;;  %3885 = vmatpush3.msra.mxu0 %v3060_v42 }
 0x229   :  { %3866 = vmatpush3.msra.mxu1 %v3048_v43  ;;  %3886 = vmatprep.subr.mxu0 %v3059_v44 }
 0x22a   :  { %3867 = vmatprep.subr.mxu1 %v3047_v45  ;;  %3887 = vmatpush3.msra.mxu0 %v3059_v44 }
 0x22b   :  { %3868 = vmatpush3.msra.mxu1 %v3047_v45  ;;  %3888 = vmatprep.subr.mxu0 %v3058_v46 }
 0x22c   :  { %3869 = vmatprep.subr.mxu1 %v3046_v47  ;;  %3889 = vmatpush3.msra.mxu0 %v3058_v46 }
 0x22d   :  { %3870 = vmatpush3.msra.mxu1 %v3046_v47  ;;  %3890 = vmatprep.subr.mxu0 %v3057_v48 }
 0x22e   :  { %3871 = vmatprep.subr.mxu1 %v3045_v49  ;;  %3891 = vmatpush3.msra.mxu0 %v3057_v48  ;;  %v4195_v48 = vld [vmem:[%s5380_s2] ss:$0 sm:$0xff] }
 0x22f   :  { %3872 = vmatpush3.msra.mxu1 %v3045_v49  ;;  %3892 = vmatprep.subr.mxu0 %v3056_v50 }
 0x230   :  { %3873 = vmatprep.subr.mxu1 %v3044_v51  ;;  %3893 = vmatpush3.msra.mxu0 %v3056_v50 }
 0x231   :  { %3874 = vmatpush3.msra.mxu1 %v3044_v51  ;;  %3894 = vmatprep.subr.mxu0 %v3055_v52 }
 0x232   :  { %3875 = vmatprep.subr.mxu1 %v3043_v53  ;;  %3895 = vmatpush3.msra.mxu0 %v3055_v52 }
 0x233   :  { %3876 = vmatpush3.msra.mxu1 %v3043_v53  ;;  %3896 = vmatprep.subr.mxu0 %v3054_v54 }
 0x234   :  { %3877 = vmatprep.subr.mxu1 %v3042_v55  ;;  %3879 = vmatprep.mubr.msk.f32.mxu1 %vm66_vm0, %v3040_v56 }
 0x235   :  { %3878 = vmatpush3.msra.mxu1 %v3042_v55  ;;  %3897 = vmatpush3.msra.mxu0 %v3054_v54 }
 0x236   :  { %3898 = vmatprep.mubr.msk.f32.mxu0 %vm66_vm0, %v3052_v57  ;;  %3880 = vmatmul.mubr.msk.f32.vlgmr.msra.gmra.mxu1 %vm66_vm0, %v3041_v58 }
 0x237   :  { %3899 = vmatmul.mubr.msk.f32.vlgmr.msra.gmra.mxu0 %vm66_vm0, %v3053_v59  ;;  %3901 = vmatprep.subr.mxu1 %v1728_v60 }
 0x238   :  { %3932 = vmatprep.subr.mxu0 %v1825_v61  ;;  %3902 = vmatpush3.msra.mxu1 %v1728_v60 }
 0x239   :  { %3933 = vmatpush3.msra.mxu0 %v1825_v61  ;;  %3903 = vmatprep.subr.mxu1 %v1727_v62  ;;  %v3080_v61 = vld [vmem:[%s5381_s3 + $0xd0] sm:$0xff] }
 0x23a   :  { %3934 = vmatprep.subr.mxu0 %v1824_v63  ;;  %3904 = vmatpush3.msra.mxu1 %v1727_v62  ;;  %v3096_v62 = vld [vmem:[%s5382_s4 + $0xd0] sm:$0xff] }
 0x23b   :  { %3935 = vmatpush3.msra.mxu0 %v1824_v63  ;;  %3905 = vmatprep.subr.mxu1 %v1726_v0 }
 0x23c   :  { %3936 = vmatprep.subr.mxu0 %v1823_v1  ;;  %3906 = vmatpush3.msra.mxu1 %v1726_v0  ;;  %v3079_v0 = vld [vmem:[%s5381_s3 + $0xc8] sm:$0xff] }
 0x23d   :  { %3937 = vmatpush3.msra.mxu0 %v1823_v1  ;;  %3907 = vmatprep.subr.mxu1 %v1725_v2  ;;  %v3095_v1 = vld [vmem:[%s5382_s4 + $0xc8] sm:$0xff] }
 0x23e   :  { %3938 = vmatprep.subr.mxu0 %v1822_v3  ;;  %3908 = vmatpush3.msra.mxu1 %v1725_v2  ;;  %v3078_v2 = vld [vmem:[%s5381_s3 + $0xc0] sm:$0xff] }
 0x23f   :  { %3939 = vmatpush3.msra.mxu0 %v1822_v3  ;;  %3909 = vmatprep.subr.mxu1 %v1724_v4  ;;  %v3094_v3 = vld [vmem:[%s5382_s4 + $0xc0] sm:$0xff] }
 0x240   :  { %3940 = vmatprep.subr.mxu0 %v1821_v6  ;;  %3910 = vmatpush3.msra.mxu1 %v1724_v4  ;;  %v3077_v4 = vld [vmem:[%s5381_s3 + $0xb8] sm:$0xff] }
 0x241   :  { %3941 = vmatpush3.msra.mxu0 %v1821_v6  ;;  %3911 = vmatprep.subr.mxu1 %v1723_v7  ;;  %v3093_v6 = vld [vmem:[%s5382_s4 + $0xb8] sm:$0xff] }
 0x242   :  { %3942 = vmatprep.subr.mxu0 %v1820_v8  ;;  %3912 = vmatpush3.msra.mxu1 %v1723_v7  ;;  %v3076_v7 = vld [vmem:[%s5381_s3 + $0xb0] sm:$0xff] }
 0x243   :  { %3943 = vmatpush3.msra.mxu0 %v1820_v8  ;;  %3913 = vmatprep.subr.mxu1 %v1722_v9  ;;  %v3092_v8 = vld [vmem:[%s5382_s4 + $0xb0] sm:$0xff] }
 0x244   :  { %3944 = vmatprep.subr.mxu0 %v1819_v10  ;;  %3914 = vmatpush3.msra.mxu1 %v1722_v9  ;;  %v3075_v9 = vld [vmem:[%s5381_s3 + $0xa8] sm:$0xff] }
 0x245   :  { %3945 = vmatpush3.msra.mxu0 %v1819_v10  ;;  %3915 = vmatprep.subr.mxu1 %v1721_v11  ;;  %v3091_v10 = vld [vmem:[%s5382_s4 + $0xa8] sm:$0xff] }
 0x246   :  { %3946 = vmatprep.subr.mxu0 %v1818_v12  ;;  %3916 = vmatpush3.msra.mxu1 %v1721_v11  ;;  %v3074_v11 = vld [vmem:[%s5381_s3 + $0xa0] sm:$0xff] }
 0x247   :  { %3947 = vmatpush3.msra.mxu0 %v1818_v12  ;;  %3917 = vmatprep.subr.mxu1 %v1720_v13  ;;  %v3090_v12 = vld [vmem:[%s5382_s4 + $0xa0] sm:$0xff] }
 0x248   :  { %3948 = vmatprep.subr.mxu0 %v1817_v14  ;;  %3918 = vmatpush3.msra.mxu1 %v1720_v13  ;;  %v3073_v13 = vld [vmem:[%s5381_s3 + $0x98] sm:$0xff] }
 0x249   :  { %3949 = vmatpush3.msra.mxu0 %v1817_v14  ;;  %3919 = vmatprep.subr.mxu1 %v1719_v15  ;;  %v3089_v14 = vld [vmem:[%s5382_s4 + $0x98] sm:$0xff] }
 0x24a   :  { %3950 = vmatprep.subr.mxu0 %v1816_v16  ;;  %3920 = vmatpush3.msra.mxu1 %v1719_v15  ;;  %v3072_v15 = vld [vmem:[%s5381_s3 + $0x90] sm:$0xff] }
 0x24b   :  { %3951 = vmatpush3.msra.mxu0 %v1816_v16  ;;  %3921 = vmatprep.subr.mxu1 %v1718_v17  ;;  %v3088_v16 = vld [vmem:[%s5382_s4 + $0x90] sm:$0xff] }
 0x24c   :  { %3952 = vmatprep.subr.mxu0 %v1815_v18  ;;  %3922 = vmatpush3.msra.mxu1 %v1718_v17  ;;  %v3071_v17 = vld [vmem:[%s5381_s3 + $0x88] sm:$0xff] }
 0x24d   :  { %3953 = vmatpush3.msra.mxu0 %v1815_v18  ;;  %3923 = vmatprep.subr.mxu1 %v1717_v19  ;;  %v3087_v18 = vld [vmem:[%s5382_s4 + $0x88] sm:$0xff] }
 0x24e   :  { %3954 = vmatprep.subr.mxu0 %v1814_v20  ;;  %3924 = vmatpush3.msra.mxu1 %v1717_v19  ;;  %v3070_v19 = vld [vmem:[%s5381_s3 + $0x80] sm:$0xff] }
 0x24f   :  { %3955 = vmatpush3.msra.mxu0 %v1814_v20  ;;  %3925 = vmatprep.subr.mxu1 %v1716_v21  ;;  %v3086_v20 = vld [vmem:[%s5382_s4 + $0x80] sm:$0xff] }
 0x250   :  { %3956 = vmatprep.subr.mxu0 %v1813_v22  ;;  %3926 = vmatpush3.msra.mxu1 %v1716_v21  ;;  %v3069_v21 = vld [vmem:[%s5381_s3 + $0x78] sm:$0xff] }
 0x251   :  { %3957 = vmatpush3.msra.mxu0 %v1813_v22  ;;  %3927 = vmatprep.subr.mxu1 %v1715_v23  ;;  %v3085_v22 = vld [vmem:[%s5382_s4 + $0x78] sm:$0xff] }
 0x252   :  { %3958 = vmatprep.subr.mxu0 %v1812_v24  ;;  %3928 = vmatpush3.msra.mxu1 %v1715_v23  ;;  %v3068_v23 = vld [vmem:[%s5381_s3 + $0x70] sm:$0xff] }
 0x253   :  { %3959 = vmatpush3.msra.mxu0 %v1812_v24  ;;  %3963 = vmatprep.subr.mxu1 %v3081_v25  ;;  %v3084_v24 = vld [vmem:[%s5382_s4 + $0x70] sm:$0xff] }
 0x254   :  { %3994 = vmatprep.subr.mxu0 %v3097_v26 }
 0x2c0   :  { %v1001_v27 = vpop.f32.mrf.mxu1 }
 0x2c1   :  { %v1171_v28 = vpop.f32.mrf.mxu0  ;;  %v1005_v32 = vadd.f32 %v1001_v27, %v4998_v31 }
 0x2c2   :  { %v3768_v29 = vpop.f32.mrf.mxu1 }
 0x2c3   :  { %v3798_v30 = vpop.f32.mrf.mxu0  ;;  %v3112_v29 = vld [vmem:[%s5381_s3 + $0x140] sm:$0xff] }
 0x2c4   :  { %v3128_v30 = vld [vmem:[%s5382_s4 + $0x140] sm:$0xff] }
 0x2cd   :  { %v1086_v33 = vpop.f32.mrf.mxu1 }
 0x2ce   :  { %v1090_v34 = vadd.f32 %v1086_v33, %v1005_v32  ;;  %v1341_v35 = vpop.f32.mrf.mxu0  ;;  %v3111_v32 = vld [vmem:[%s5381_s3 + $0x138] sm:$0xff] }
 0x2cf   :  { %v3783_v36 = vpop.f32.mrf.mxu1  ;;  %v3127_v33 = vld [vmem:[%s5382_s4 + $0x138] sm:$0xff] }
 0x2d0   :  { %v3828_v37 = vpop.f32.mrf.mxu0  ;;  %v1175_v38 = vadd.f32 %v1171_v28, %v1090_v34  ;;  %v3110_v34 = vld [vmem:[%s5381_s3 + $0x130] sm:$0xff]  ;;  %v3109_v36 = vld [vmem:[%s5381_s3 + $0x128] sm:$0xff] }
 0x2d1   :  { %v3125_v37 = vld [vmem:[%s5382_s4 + $0x128] sm:$0xff] }
 0x2da   :  { %v1256_v39 = vpop.f32.mrf.mxu1 }
 0x2db   :  { %v1260_v40 = vadd.f32 %v1256_v39, %v1175_v38  ;;  %v3108_v38 = vld [vmem:[%s5381_s3 + $0x120] sm:$0xff] }
 0x2dc   :  { %v3813_v41 = vpop.f32.mrf.mxu1  ;;  %v3124_v39 = vld [vmem:[%s5382_s4 + $0x120] sm:$0xff] }
 0x2dd   :  { %v1345_v42 = vadd.f32 %v1341_v35, %v1260_v40  ;;  %v3126_v35 = vld [vmem:[%s5382_s4 + $0x130] sm:$0xff]  ;;  %v3107_v40 = vld [vmem:[%s5381_s3 + $0x118] sm:$0xff] }
 0x2de   :  { %v3123_v41 = vld [vmem:[%s5382_s4 + $0x118] sm:$0xff] }
 0x2e4   :  { %v3862_v46 = vpop.f32.mrf.mxu0 }
 0x2e5   :  { %v1524_v49 = vadd.f32 %v4195_v48, %v3862_v46  ;;  %v3121_v46 = vld [vmem:[%s5382_s4 + $0x108] sm:$0xff] }
 0x2e6   :  { %v1426_v43 = vpop.f32.mrf.mxu1  ;;  %v1514_v47 = vpop.f32.mrf.mxu0 }
 0x2e7   :  { %v5001_v44 = vadd.f32 %v1426_v43, %v1345_v42  ;;  %v1523_v51 = vadd.f32 %v4195_v48, %v1514_v47  ;;  %v3106_v42 = vld [vmem:[%s5381_s3 + $0x110] sm:$0xff]  ;;  %v3104_v47 = vld [vmem:[%s5381_s3 + $0x100] sm:$0xff] }
 0x2e8   :  { %v3843_v45 = vpop.f32.mrf.mxu1  ;;  %v3122_v43 = vld [vmem:[%s5382_s4 + $0x110] sm:$0xff]  ;;  %v3120_v48 = vld [vmem:[%s5382_s4 + $0x100] sm:$0xff] }
 0x2e9   :  { %v3105_v45 = vld [vmem:[%s5381_s3 + $0x108] sm:$0xff] }
 0x2f6   :  { %v3881_v50 = vpop.f32.mrf.mxu1 }
 0x2f7   :  { %v1617_v52 = vadd.f32 %v3881_v50, %v1524_v49  ;;  %v3900_v53 = vpop.f32.mrf.mxu0  ;;  %v3103_v49 = vld [vmem:[%s5381_s3 + $0xf8] sm:$0xff] }
 0x2f8   :  { %v1607_v54 = vpop.f32.mrf.mxu1  ;;  %v3119_v50 = vld [vmem:[%s5382_s4 + $0xf8] sm:$0xff] }
 0x2f9   :  { %v1710_v55 = vadd.f32 %v3900_v53, %v1617_v52  ;;  %v1616_v56 = vadd.f32 %v1607_v54, %v1523_v51  ;;  %v1700_v57 = vpop.f32.mrf.mxu0  ;;  %v3102_v51 = vld [vmem:[%s5381_s3 + $0xf0] sm:$0xff]  ;;  %v3101_v53 = vld [vmem:[%s5381_s3 + $0xe8] sm:$0xff] }
 0x2fa   :  { %v3118_v52 = vld [vmem:[%s5382_s4 + $0xf0] sm:$0xff]  ;;  %v3117_v54 = vld [vmem:[%s5382_s4 + $0xe8] sm:$0xff] }
 0x2fb   :  { %1712 = vst.msk [vmem:[#allocation2 + $0x8] sm:$0x3f] %vm340_vm1, %v1710_v55  ;;  %v1709_v58 = vadd.f32 %v1700_v57, %v1616_v56  ;;  %v3100_v55 = vld [vmem:[%s5381_s3 + $0xe0] sm:$0xff] }
 0x2fc   :  { %v3116_v56 = vld [vmem:[%s5382_s4 + $0xe0] sm:$0xff] }
 0x2fd   :  { %1711 = vst.msk [vmem:[#allocation2] sm:$0xff] %vm338_vm2, %v1709_v58  ;;  %v2296_v58 = vld [vmem:[%s5384_s6 + $0x28] sm:$0xff] }
 0x302   :  { %v1714_v60 = vld [vmem:[#allocation2 + $0x8] sm:$0xf] }
 0x303   :  { %v1904_v27 = vld [vmem:[#allocation2 + $0x9] sm:$0xf] }
 0x304   :  { %v1713_v59 = vld [vmem:[#allocation2] sm:$0xff]  ;;  %v2094_v57 = vld [vmem:[#allocation2 + $0xa] sm:$0xf] }
 0x305   :  { %3929 = vmatprep.mubr.msk.f32.mxu1 %vm338_vm2, %v1713_v59  ;;  %3960 = vmatprep.mubr.msk.f32.mxu0 %vm338_vm2, %v1713_v59  ;;  %v1903_v63 = vld [vmem:[#allocation2 + $0x1] sm:$0xff]  ;;  %v3138_v59 = vld [vmem:[%s5384_s6 + $0x58] sm:$0xff] }
 0x306   :  { %3930 = vmatmul.mubr.msk.f32.vlgmr.msra.gmra.mxu1 %vm338_vm2, %v1714_v60  ;;  %3961 = vmatmul.mubr.msk.f32.vlgmr.msra.gmra.mxu0 %vm338_vm2, %v1714_v60  ;;  %v2093_v28 = vld [vmem:[#allocation2 + $0x2] sm:$0xff] }
 0x307   :  { %3964 = vmatpush3.msra.mxu1 %v3081_v25  ;;  %3995 = vmatpush3.msra.mxu0 %v3097_v26  ;;  %v3113_v25 = vld [vmem:[%s5381_s3 + $0x148] sm:$0xff]  ;;  %v2295_v60 = vld [vmem:[%s5384_s6 + $0x20] sm:$0xff] }
 0x308   :  { %3965 = vmatprep.subr.mxu1 %v3080_v61  ;;  %3991 = vmatprep.mubr.msk.f32.mxu1 %vm338_vm2, %v1903_v63  ;;  %v3129_v26 = vld [vmem:[%s5382_s4 + $0x148] sm:$0xff] }
 0x309   :  { %3996 = vmatprep.subr.mxu0 %v3096_v62  ;;  %4022 = vmatprep.mubr.msk.f32.mxu0 %vm338_vm2, %v1903_v63  ;;  %v3136_v63 = vld [vmem:[%s5384_s6 + $0x48] sm:$0xff] }
 0x30a   :  { %3966 = vmatpush3.msra.mxu1 %v3080_v61  ;;  %3997 = vmatpush3.msra.mxu0 %v3096_v62  ;;  %v3137_v61 = vld [vmem:[%s5384_s6 + $0x50] sm:$0xff]  ;;  %v2294_v62 = vld [vmem:[%s5384_s6 + $0x18] sm:$0xff] }
 0x30b   :  { %3967 = vmatprep.subr.mxu1 %v3079_v0  ;;  %3998 = vmatprep.subr.mxu0 %v3095_v1 }
 0x30c   :  { %3968 = vmatpush3.msra.mxu1 %v3079_v0  ;;  %3999 = vmatpush3.msra.mxu0 %v3095_v1  ;;  %v2293_v0 = vld [vmem:[%s5384_s6 + $0x10] sm:$0xff]  ;;  %v3135_v1 = vld [vmem:[%s5384_s6 + $0x40] sm:$0xff] }
 0x30d   :  { %3969 = vmatprep.subr.mxu1 %v3078_v2  ;;  %4000 = vmatprep.subr.mxu0 %v3094_v3 }
 0x30e   :  { %3970 = vmatpush3.msra.mxu1 %v3078_v2  ;;  %4001 = vmatpush3.msra.mxu0 %v3094_v3  ;;  %v2292_v2 = vld [vmem:[%s5384_s6 + $0x8] sm:$0xff]  ;;  %v3134_v3 = vld [vmem:[%s5384_s6 + $0x38] sm:$0xff] }
 0x30f   :  { %3971 = vmatprep.subr.mxu1 %v3077_v4  ;;  %4002 = vmatprep.subr.mxu0 %v3093_v6 }
 0x310   :  { %3972 = vmatpush3.msra.mxu1 %v3077_v4  ;;  %4003 = vmatpush3.msra.mxu0 %v3093_v6  ;;  %v2291_v4 = vld [vmem:[%s5384_s6] sm:$0xff]  ;;  %v3133_v6 = vld [vmem:[%s5384_s6 + $0x30] sm:$0xff] }
 0x311   :  { %3973 = vmatprep.subr.mxu1 %v3076_v7  ;;  %4004 = vmatprep.subr.mxu0 %v3092_v8 }
 0x312   :  { %3974 = vmatpush3.msra.mxu1 %v3076_v7  ;;  %4005 = vmatpush3.msra.mxu0 %v3092_v8 }
 0x313   :  { %3975 = vmatprep.subr.mxu1 %v3075_v9  ;;  %4006 = vmatprep.subr.mxu0 %v3091_v10 }
 0x314   :  { %3976 = vmatpush3.msra.mxu1 %v3075_v9  ;;  %4007 = vmatpush3.msra.mxu0 %v3091_v10 }
 0x315   :  { %3977 = vmatprep.subr.mxu1 %v3074_v11  ;;  %4008 = vmatprep.subr.mxu0 %v3090_v12 }
 0x316   :  { %3978 = vmatpush3.msra.mxu1 %v3074_v11  ;;  %4009 = vmatpush3.msra.mxu0 %v3090_v12 }
 0x317   :  { %3979 = vmatprep.subr.mxu1 %v3073_v13  ;;  %4010 = vmatprep.subr.mxu0 %v3089_v14 }
 0x318   :  { %3980 = vmatpush3.msra.mxu1 %v3073_v13  ;;  %4011 = vmatpush3.msra.mxu0 %v3089_v14  ;;  %v4196_v13 = vld [vmem:[%s5383_s5] ss:$0 sm:$0xff] }
 0x319   :  { %3981 = vmatprep.subr.mxu1 %v3072_v15  ;;  %4012 = vmatprep.subr.mxu0 %v3088_v16 }
 0x31a   :  { %3982 = vmatpush3.msra.mxu1 %v3072_v15  ;;  %4013 = vmatpush3.msra.mxu0 %v3088_v16 }
 0x31b   :  { %3983 = vmatprep.subr.mxu1 %v3071_v17  ;;  %4014 = vmatprep.subr.mxu0 %v3087_v18 }
 0x31c   :  { %3984 = vmatpush3.msra.mxu1 %v3071_v17  ;;  %4015 = vmatpush3.msra.mxu0 %v3087_v18 }
 0x31d   :  { %3985 = vmatprep.subr.mxu1 %v3070_v19  ;;  %4016 = vmatprep.subr.mxu0 %v3086_v20 }
 0x31e   :  { %3986 = vmatpush3.msra.mxu1 %v3070_v19  ;;  %4017 = vmatpush3.msra.mxu0 %v3086_v20 }
 0x31f   :  { %3987 = vmatprep.subr.mxu1 %v3069_v21  ;;  %4018 = vmatprep.subr.mxu0 %v3085_v22 }
 0x320   :  { %3988 = vmatpush3.msra.mxu1 %v3069_v21  ;;  %4019 = vmatpush3.msra.mxu0 %v3085_v22 }
 0x321   :  { %3989 = vmatprep.subr.mxu1 %v3068_v23  ;;  %4020 = vmatprep.subr.mxu0 %v3084_v24 }
 0x322   :  { %3990 = vmatpush3.msra.mxu1 %v3068_v23  ;;  %4021 = vmatpush3.msra.mxu0 %v3084_v24 }
 0x323   :  { %3992 = vmatmul.mubr.msk.f32.vlgmr.msra.gmra.mxu1 %vm338_vm2, %v1904_v27  ;;  %4023 = vmatmul.mubr.msk.f32.vlgmr.msra.gmra.mxu0 %vm338_vm2, %v1904_v27 }
 0x324   :  { %4025 = vmatprep.subr.mxu1 %v3113_v25  ;;  %4056 = vmatprep.subr.mxu0 %v3129_v26 }
 0x325   :  { %4026 = vmatpush3.msra.mxu1 %v3113_v25  ;;  %4053 = vmatprep.mubr.msk.f32.mxu1 %vm338_vm2, %v2093_v28 }
 0x326   :  { %4057 = vmatpush3.msra.mxu0 %v3129_v26  ;;  %4084 = vmatprep.mubr.msk.f32.mxu0 %vm338_vm2, %v2093_v28 }
 0x327   :  { %4027 = vmatprep.subr.mxu1 %v3112_v29  ;;  %4058 = vmatprep.subr.mxu0 %v3128_v30 }
 0x328   :  { %4028 = vmatpush3.msra.mxu1 %v3112_v29  ;;  %4059 = vmatpush3.msra.mxu0 %v3128_v30 }
 0x329   :  { %4029 = vmatprep.subr.mxu1 %v3111_v32  ;;  %4060 = vmatprep.subr.mxu0 %v3127_v33 }
 0x32a   :  { %4030 = vmatpush3.msra.mxu1 %v3111_v32  ;;  %4061 = vmatpush3.msra.mxu0 %v3127_v33 }
 0x32b   :  { %4031 = vmatprep.subr.mxu1 %v3110_v34  ;;  %4062 = vmatprep.subr.mxu0 %v3126_v35 }
 0x32c   :  { %4032 = vmatpush3.msra.mxu1 %v3110_v34  ;;  %4063 = vmatpush3.msra.mxu0 %v3126_v35 }
 0x32d   :  { %4033 = vmatprep.subr.mxu1 %v3109_v36  ;;  %4064 = vmatprep.subr.mxu0 %v3125_v37 }
 0x32e   :  { %4034 = vmatpush3.msra.mxu1 %v3109_v36  ;;  %4065 = vmatpush3.msra.mxu0 %v3125_v37 }
 0x32f   :  { %4035 = vmatprep.subr.mxu1 %v3108_v38  ;;  %4066 = vmatprep.subr.mxu0 %v3124_v39 }
 0x330   :  { %4036 = vmatpush3.msra.mxu1 %v3108_v38  ;;  %4067 = vmatpush3.msra.mxu0 %v3124_v39 }
 0x331   :  { %4037 = vmatprep.subr.mxu1 %v3107_v40  ;;  %4068 = vmatprep.subr.mxu0 %v3123_v41 }
 0x332   :  { %4038 = vmatpush3.msra.mxu1 %v3107_v40  ;;  %4069 = vmatpush3.msra.mxu0 %v3123_v41 }
 0x333   :  { %4039 = vmatprep.subr.mxu1 %v3106_v42  ;;  %4070 = vmatprep.subr.mxu0 %v3122_v43 }
 0x334   :  { %4040 = vmatpush3.msra.mxu1 %v3106_v42  ;;  %4071 = vmatpush3.msra.mxu0 %v3122_v43  ;;  %v3145_v42 = vld [vmem:[%s5384_s6 + $0x88] sm:$0xff] }
 0x335   :  { %4041 = vmatprep.subr.mxu1 %v3105_v45  ;;  %4072 = vmatprep.subr.mxu0 %v3121_v46 }
 0x336   :  { %4042 = vmatpush3.msra.mxu1 %v3105_v45  ;;  %4073 = vmatpush3.msra.mxu0 %v3121_v46  ;;  %v3152_v45 = vld [vmem:[%s5384_s6 + $0xb8] sm:$0xff]  ;;  %v3144_v46 = vld [vmem:[%s5384_s6 + $0x80] sm:$0xff] }
 0x337   :  { %4043 = vmatprep.subr.mxu1 %v3104_v47  ;;  %4074 = vmatprep.subr.mxu0 %v3120_v48 }
 0x338   :  { %4044 = vmatpush3.msra.mxu1 %v3104_v47  ;;  %4075 = vmatpush3.msra.mxu0 %v3120_v48  ;;  %v3151_v47 = vld [vmem:[%s5384_s6 + $0xb0] sm:$0xff]  ;;  %v3143_v48 = vld [vmem:[%s5384_s6 + $0x78] sm:$0xff] }
 0x339   :  { %4045 = vmatprep.subr.mxu1 %v3103_v49  ;;  %4076 = vmatprep.subr.mxu0 %v3119_v50 }
 0x33a   :  { %4046 = vmatpush3.msra.mxu1 %v3103_v49  ;;  %4077 = vmatpush3.msra.mxu0 %v3119_v50  ;;  %v3150_v49 = vld [vmem:[%s5384_s6 + $0xa8] sm:$0xff]  ;;  %v3142_v50 = vld [vmem:[%s5384_s6 + $0x70] sm:$0xff] }
 0x33b   :  { %4047 = vmatprep.subr.mxu1 %v3102_v51  ;;  %4078 = vmatprep.subr.mxu0 %v3118_v52 }
 0x33c   :  { %4048 = vmatpush3.msra.mxu1 %v3102_v51  ;;  %4079 = vmatpush3.msra.mxu0 %v3118_v52 }
 0x33d   :  { %4049 = vmatprep.subr.mxu1 %v3101_v53  ;;  %4080 = vmatprep.subr.mxu0 %v3117_v54 }
 0x33e   :  { %4050 = vmatpush3.msra.mxu1 %v3101_v53  ;;  %4081 = vmatpush3.msra.mxu0 %v3117_v54  ;;  %v3149_v53 = vld [vmem:[%s5384_s6 + $0xa0] sm:$0xff] }
 0x33f   :  { %4051 = vmatprep.subr.mxu1 %v3100_v55  ;;  %4082 = vmatprep.subr.mxu0 %v3116_v56 }
 0x340   :  { %4052 = vmatpush3.msra.mxu1 %v3100_v55  ;;  %4083 = vmatpush3.msra.mxu0 %v3116_v56  ;;  %v3141_v56 = vld [vmem:[%s5384_s6 + $0x68] sm:$0xff] }
 0x341   :  { %4054 = vmatmul.mubr.msk.f32.vlgmr.msra.gmra.mxu1 %vm338_vm2, %v2094_v57  ;;  %4085 = vmatmul.mubr.msk.f32.vlgmr.msra.gmra.mxu0 %vm338_vm2, %v2094_v57  ;;  %v3148_v57 = vld [vmem:[%s5384_s6 + $0x98] sm:$0xff] }
 0x342   :  { %4087 = vmatprep.subr.mxu1 %v4219_v5  ;;  %4102 = vmatprep.subr.mxu0 %v4219_v5 }
 0x343   :  { %4099 = vmatprep.mubr.msk.f32.mxu1 %vm4220_vm3, %v4219_v5  ;;  %4114 = vmatprep.mubr.msk.f32.mxu0 %vm4220_vm3, %v4219_v5 }
 0x344   :  { %4088 = vmatpush3.msra.mxu1 %v2296_v58  ;;  %4103 = vmatpush3.msra.mxu0 %v3138_v59  ;;  %v3140_v59 = vld [vmem:[%s5384_s6 + $0x60] sm:$0xff] }
 0x345   :  { %4089 = vmatprep.subr.mxu1 %v4219_v5  ;;  %4104 = vmatprep.subr.mxu0 %v4219_v5 }
 0x346   :  { %4090 = vmatpush3.msra.mxu1 %v2295_v60  ;;  %4105 = vmatpush3.msra.mxu0 %v3137_v61  ;;  %v3147_v61 = vld [vmem:[%s5384_s6 + $0x90] sm:$0xff] }
 0x347   :  { %4091 = vmatprep.subr.mxu1 %v4219_v5  ;;  %4106 = vmatprep.subr.mxu0 %v4219_v5 }
 0x348   :  { %4092 = vmatpush3.msra.mxu1 %v2294_v62  ;;  %4107 = vmatpush3.msra.mxu0 %v3136_v63 }
 0x349   :  { %4093 = vmatprep.subr.mxu1 %v4219_v5  ;;  %4108 = vmatprep.subr.mxu0 %v4219_v5 }
 0x34a   :  { %4094 = vmatpush3.msra.mxu1 %v2293_v0  ;;  %4109 = vmatpush3.msra.mxu0 %v3135_v1  ;;  %v3159_v0 = vld [vmem:[%s5384_s6 + $0xe8] sm:$0xff]  ;;  %v3166_v1 = vld [vmem:[%s5384_s6 + $0x118] sm:$0xff] }
 0x34b   :  { %4095 = vmatprep.subr.mxu1 %v4219_v5  ;;  %4110 = vmatprep.subr.mxu0 %v4219_v5 }
 0x34c   :  { %4096 = vmatpush3.msra.mxu1 %v2292_v2  ;;  %4111 = vmatpush3.msra.mxu0 %v3134_v3  ;;  %v3158_v2 = vld [vmem:[%s5384_s6 + $0xe0] sm:$0xff]  ;;  %v3165_v3 = vld [vmem:[%s5384_s6 + $0x110] sm:$0xff] }
 0x34d   :  { %4097 = vmatprep.subr.mxu1 %v4219_v5  ;;  %4112 = vmatprep.subr.mxu0 %v4219_v5 }
 0x34e   :  { %4098 = vmatpush3.msra.mxu1 %v2291_v4  ;;  %4113 = vmatpush3.msra.mxu0 %v3133_v6  ;;  %v3157_v4 = vld [vmem:[%s5384_s6 + $0xd8] sm:$0xff]  ;;  %v3164_v6 = vld [vmem:[%s5384_s6 + $0x108] sm:$0xff] }
 0x34f   :  { %4117 = vmatprep.subr.mxu1 %v4219_v5  ;;  %4132 = vmatprep.subr.mxu0 %v4219_v5 }
 0x3c6   :  { %v3931_v7 = vpop.f32.mrf.mxu1  ;;  %v3962_v8 = vpop.f32.mrf.mxu0 }
 0x3c7   :  { %v1811_v14 = vadd.f32 %v4196_v13, %v3931_v7  ;;  %v1902_v15 = vadd.f32 %v4196_v13, %v3962_v8  ;;  %v3156_v7 = vld [vmem:[%s5384_s6 + $0xd0] sm:$0xff] }
 0x3c8   :  { %v1801_v9 = vpop.f32.mrf.mxu1  ;;  %v1892_v10 = vpop.f32.mrf.mxu0 }
 0x3c9   :  { %v1810_v18 = vadd.f32 %v4196_v13, %v1801_v9  ;;  %v1901_v19 = vadd.f32 %v4196_v13, %v1892_v10  ;;  %v3163_v10 = vld [vmem:[%s5384_s6 + $0x100] sm:$0xff]  ;;  %v3155_v13 = vld [vmem:[%s5384_s6 + $0xc8] sm:$0xff] }
 0x3e3   :  { %v3993_v11 = vpop.f32.mrf.mxu1  ;;  %v4024_v12 = vpop.f32.mrf.mxu0 }
 0x3e4   :  { %v2001_v20 = vadd.f32 %v3993_v11, %v1811_v14  ;;  %v2092_v21 = vadd.f32 %v4024_v12, %v1902_v15  ;;  %v3162_v14 = vld [vmem:[%s5384_s6 + $0xf8] sm:$0xff] }
 0x3e5   :  { %v1991_v16 = vpop.f32.mrf.mxu1  ;;  %v2082_v17 = vpop.f32.mrf.mxu0 }
 0x3e6   :  { %v2000_v24 = vadd.f32 %v1991_v16, %v1810_v18  ;;  %v2091_v25 = vadd.f32 %v2082_v17, %v1901_v19  ;;  %v3154_v16 = vld [vmem:[%s5384_s6 + $0xc0] sm:$0xff]  ;;  %v3161_v18 = vld [vmem:[%s5384_s6 + $0xf0] sm:$0xff] }
 0x401   :  { %v4055_v22 = vpop.f32.mrf.mxu1  ;;  %v4086_v23 = vpop.f32.mrf.mxu0 }
 0x402   :  { %v2191_v26 = vadd.f32 %v4055_v22, %v2001_v20  ;;  %v2282_v27 = vadd.f32 %v4086_v23, %v2092_v21  ;;  %v54_v21 = vld [vmem:[%s5386_s8 + $0x18] sm:$0xff]  ;;  %v53_v22 = vld [vmem:[%s5386_s8 + $0x10] sm:$0xff]  ;;  %v52_v23 = vld [vmem:[%s5386_s8 + $0x8] sm:$0xff] }
 0x403   :  { %v2181_v28 = vpop.f32.mrf.mxu1  ;;  %v2272_v29 = vpop.f32.mrf.mxu0 }
 0x404   :  { %v2284_v30 = vmax.f32 %v2191_v26, %v2282_v27  ;;  %v2190_v32 = vadd.f32 %v2181_v28, %v2000_v24  ;;  %v2281_v33 = vadd.f32 %v2272_v29, %v2091_v25  ;;  %v51_v24 = vld [vmem:[%s5386_s8] sm:$0xff] }
 0x406   :  { %2286 = vst.msk [vmem:[#allocation3 + $0x8] sm:$0xf] %vm920_vm4, %v2284_v30  ;;  %v2283_v34 = vmax.f32 %v2190_v32, %v2281_v33 }
 0x408   :  { %2285 = vst.msk [vmem:[#allocation3] sm:$0xff] %vm918_vm5, %v2283_v34 }
 0x40d   :  { %v2623_v8 = vld [vmem:[#allocation3 + $0x8] sm:$0x1]  ;;  %v2624_v9 = vld [vmem:[#allocation3 + $0x9] sm:$0x1]  ;;  %v2707_v11 = vld [vmem:[#allocation3 + $0xa] sm:$0x1] }
 0x40e   :  { %v2708_v12 = vld [vmem:[#allocation3 + $0xb] sm:$0x1]  ;;  %v2625_v15 = vmax.f32 %v2623_v8, %v2624_v9 }
 0x40f   :  { %v2287_v35 = vld [vmem:[#allocation3] sm:$0x1]  ;;  %v2288_v36 = vld [vmem:[#allocation3 + $0x1] sm:$0x1]  ;;  %v2371_v37 = vld [vmem:[#allocation3 + $0x2] sm:$0x1]  ;;  %v2709_v17 = vmax.f32 %v2707_v11, %v2708_v12 }
 0x410   :  { %v2289_v38 = vmax.f32 %v2287_v35, %v2288_v36  ;;  %v2372_v39 = vld [vmem:[#allocation3 + $0x3] sm:$0x1]  ;;  %v2455_v51 = vld [vmem:[#allocation3 + $0x4] sm:$0x1]  ;;  %v2456_v52 = vld [vmem:[#allocation3 + $0x5] sm:$0x1]  ;;  %v2792_v36 = vlaneseq }
 0x411   :  { %v2373_v40 = vmax.f32 %v2371_v37, %v2372_v39  ;;  %v2539_v54 = vld [vmem:[#allocation3 + $0x6] sm:$0x1]  ;;  %v2540_v55 = vld [vmem:[#allocation3 + $0x7] sm:$0x1]  ;;  %v2457_v58 = vmax.f32 %v2455_v51, %v2456_v52  ;;  %v2626_v19 = vmax.f32 %v2625_v15, 0.0  ;;  %v2710_v20 = vmax.f32 %v2709_v17, 0.0 }
 0x412   :  { %v2290_v41 = vmax.f32 %v2289_v38, 0.0  ;;  %v2541_v60 = vmax.f32 %v2539_v54, %v2540_v55  ;;  %v2793_v38 = vshrl.u32 %v2792_v36, 7 }
 0x413   :  { %v2374_v43 = vmax.f32 %v2373_v40, 0.0  ;;  %v2458_v62 = vmax.f32 %v2457_v58, 0.0 }
 0x414   :  { %4100 = vmatmul.mubr.msk.f32.vlgmr.msra.gmra.mxu1 %vm918_vm5, %v2290_v41  ;;  %v2542_v63 = vmax.f32 %v2541_v60, 0.0 }
 0x415   :  { %4115 = vmatmul.mubr.msk.f32.vlgmr.msra.gmra.mxu0 %vm918_vm5, %v2374_v43  ;;  %4118 = vmatpush3.msra.mxu1 %v3145_v42 }
 0x416   :  { %4133 = vmatpush3.msra.mxu0 %v3152_v45  ;;  %4119 = vmatprep.subr.mxu1 %v4219_v5 }
 0x417   :  { %4134 = vmatprep.subr.mxu0 %v4219_v5  ;;  %4120 = vmatpush3.msra.mxu1 %v3144_v46 }
 0x418   :  { %4135 = vmatpush3.msra.mxu0 %v3151_v47  ;;  %4121 = vmatprep.subr.mxu1 %v4219_v5 }
 0x419   :  { %4136 = vmatprep.subr.mxu0 %v4219_v5  ;;  %4122 = vmatpush3.msra.mxu1 %v3143_v48 }
 0x41a   :  { %4137 = vmatpush3.msra.mxu0 %v3150_v49  ;;  %4123 = vmatprep.subr.mxu1 %v4219_v5 }
 0x41b   :  { %4138 = vmatprep.subr.mxu0 %v4219_v5  ;;  %4124 = vmatpush3.msra.mxu1 %v3142_v50 }
 0x41c   :  { %4139 = vmatpush3.msra.mxu0 %v3149_v53  ;;  %4125 = vmatprep.subr.mxu1 %v4219_v5 }
 0x41d   :  { %4140 = vmatprep.subr.mxu0 %v4219_v5  ;;  %4126 = vmatpush3.msra.mxu1 %v3141_v56 }
 0x41e   :  { %4141 = vmatpush3.msra.mxu0 %v3148_v57  ;;  %4127 = vmatprep.subr.mxu1 %v4219_v5 }
 0x41f   :  { %4142 = vmatprep.subr.mxu0 %v4219_v5  ;;  %4128 = vmatpush3.msra.mxu1 %v3140_v59 }
 0x420   :  { %4129 = vmatprep.mubr.msk.f32.mxu1 %vm4220_vm3, %v4219_v5  ;;  %4143 = vmatpush3.msra.mxu0 %v3147_v61 }
 0x421   :  { %4144 = vmatprep.mubr.msk.f32.mxu0 %vm4220_vm3, %v4219_v5  ;;  %4130 = vmatmul.mubr.msk.f32.vlgmr.msra.gmra.mxu1 %vm918_vm5, %v2458_v62 }
 0x422   :  { %4145 = vmatmul.mubr.msk.f32.vlgmr.msra.gmra.mxu0 %vm918_vm5, %v2542_v63  ;;  %4147 = vmatprep.subr.mxu1 %v4219_v5 }
 0x423   :  { %4162 = vmatprep.subr.mxu0 %v4219_v5  ;;  %4148 = vmatpush3.msra.mxu1 %v3159_v0 }
 0x424   :  { %4163 = vmatpush3.msra.mxu0 %v3166_v1  ;;  %4149 = vmatprep.subr.mxu1 %v4219_v5 }
 0x425   :  { %4164 = vmatprep.subr.mxu0 %v4219_v5  ;;  %4150 = vmatpush3.msra.mxu1 %v3158_v2 }
 0x426   :  { %4165 = vmatpush3.msra.mxu0 %v3165_v3  ;;  %4151 = vmatprep.subr.mxu1 %v4219_v5 }
 0x427   :  { %4166 = vmatprep.subr.mxu0 %v4219_v5  ;;  %4152 = vmatpush3.msra.mxu1 %v3157_v4 }
 0x428   :  { %4167 = vmatpush3.msra.mxu0 %v3164_v6  ;;  %4153 = vmatprep.subr.mxu1 %v4219_v5 }
 0x429   :  { %4168 = vmatprep.subr.mxu0 %v4219_v5  ;;  %4154 = vmatpush3.msra.mxu1 %v3156_v7 }
 0x42a   :  { %4169 = vmatpush3.msra.mxu0 %v3163_v10  ;;  %4155 = vmatprep.subr.mxu1 %v4219_v5 }
 0x42b   :  { %4170 = vmatprep.subr.mxu0 %v4219_v5  ;;  %4156 = vmatpush3.msra.mxu1 %v3155_v13 }
 0x42c   :  { %4171 = vmatpush3.msra.mxu0 %v3162_v14  ;;  %4157 = vmatprep.subr.mxu1 %v4219_v5 }
 0x42d   :  { %4172 = vmatprep.subr.mxu0 %v4219_v5  ;;  %4158 = vmatpush3.msra.mxu1 %v3154_v16 }
 0x42e   :  { %4159 = vmatprep.mubr.msk.f32.mxu1 %vm4220_vm3, %v4219_v5  ;;  %4173 = vmatpush3.msra.mxu0 %v3161_v18 }
 0x42f   :  { %4174 = vmatprep.mubr.msk.f32.mxu0 %vm4220_vm3, %v4219_v5  ;;  %4160 = vmatmul.mubr.msk.f32.vlgmr.msra.gmra.mxu1 %vm918_vm5, %v2626_v19 }
 0x430   :  { %4175 = vmatmul.mubr.msk.f32.vlgmr.msra.gmra.mxu0 %vm918_vm5, %v2710_v20  ;;  %4177 = vmatprep.subr.mxu1 %v4219_v5 }
 0x431   :  { %4185 = vmatprep.mubr.msk.f32.mxu1 %vm4220_vm3, %v4219_v5  ;;  %4178 = vmatpush3.msra.mxu1 %v54_v21 }
 0x432   :  { %4179 = vmatprep.subr.mxu1 %v4219_v5 }
 0x433   :  { %4180 = vmatpush3.msra.mxu1 %v53_v22 }
 0x434   :  { %4181 = vmatprep.subr.mxu1 %v4219_v5 }
 0x435   :  { %4182 = vmatpush3.msra.mxu1 %v52_v23 }
 0x436   :  { %4183 = vmatprep.subr.mxu1 %v4219_v5  ;;  %v2794_v5 = vsub.s32 0, %v2793_v38 }
 0x437   :  { %4184 = vmatpush3.msra.mxu1 %v51_v24 }
 0x4d4   :  { %v2366_v25 = vpop.f32.mrf.mxu1 }
 0x4d5   :  { %v2450_v26 = vpop.f32.mrf.mxu0  ;;  %v2370_v33 = vadd.f32 %v2366_v25, %v4998_v31  ;;  %v3168_v31 = vld [vmem:[%s5387_s9] ss:$0 sm:$0xff]  ;;  %s4221_s9 = smov [#allocation4]  }
 0x4d6   :  { %v4101_v27 = vpop.f32.mrf.mxu1  ;;  %s2900_s4 = sshll.u32 %s4221_s9, 4  ;;  %s2901_s4 = int_to_ptr.vmem [resolvable:$true] %s2900_s4 }
 0x4d7   :  { %v4116_v28 = vpop.f32.mrf.mxu0  ;;  %v2454_v35 = vadd.f32 %v2450_v26, %v2370_v33  ;;  %s4197_s23 = scalar_lea.vmem %s2901_s4, 32  ;;  %p4202_p1 = scmp.lt.s32.totalorder %s2901_s4, %s2901_s4 }
 0x4d8   :  { %p4198_p0 = scmp.ne.s32.totalorder %s2901_s4, %s4197_s23  ;;  %p4203_p2 = scmp.lt.s32.totalorder %s4197_s23, %s4197_s23 }
 0x4da   :  { %p4204_p3 = por %p4203_p2, %p4202_p1 }
 0x4dc   :  { %p4205_p4 = pnand %p4204_p3, %p4198_p0 }
 0x4e1   :  { %v2534_v29 = vpop.f32.mrf.mxu1 }
 0x4e2   :  { %v2618_v30 = vpop.f32.mrf.mxu0  ;;  %v2538_v37 = vadd.f32 %v2534_v29, %v2454_v35 }
 0x4e3   :  { %v4131_v32 = vpop.f32.mrf.mxu1 }
 0x4e4   :  { %v4146_v34 = vpop.f32.mrf.mxu0  ;;  %v2622_v39 = vadd.f32 %v2618_v30, %v2538_v37 }
 0x4ef   :  { %v2702_v40 = vpop.f32.mrf.mxu1 }
 0x4f0   :  { %v2706_v41 = vadd.f32 %v2702_v40, %v2622_v39  ;;  %v2786_v42 = vpop.f32.mrf.mxu0 }
 0x4f1   :  { %v4161_v43 = vpop.f32.mrf.mxu1 }
 0x4f2   :  { %v2790_v45 = vadd.f32 %v2786_v42, %v2706_v41  ;;  %v4176_v46 = vpop.f32.mrf.mxu0 }
 0x4f4   :  { %v2795_v47 = vrot.slane %v2790_v45, %v2794_v5 }
 0x4f6   :  { %v2798_v48 = vsel %vm2797_vm6, %v5001_v44, %v2795_v47 }
 0x4f7   :  { %4186 = vmatmul.mubr.msk.f32.vlgmr.msra.gmra.mxu1 %vm2805_vm7, %v2798_v48 }
 0x5b7   :  { %v2875_v49 = vpop.f32.mrf.mxu1 }
 0x5b8   :  { %v2876_v50 = vadd.f32 %v3168_v31, %v2875_v49 }
 0x5b9   :  { %v4187_v51 = vpop.f32.mrf.mxu1 }
 0x5ba   :  { %v2880_v52 = vsel %vm2879_vm8, %v2876_v50, -inf }
 0x5bb   :  { %2881 = vmax.xlane.f32.xlu0 %v2880_v52 }
 0x644   :  { %v2882_v53 = vpop.xlane.xlu0 %2881 }
 0x645   :  { %v2883_v54 = vsub.f32 %v2876_v50, %v2882_v53 }
 0x647   :  { %v2884_v55 = vmul.f32 1.442695, %v2883_v54 }
 0x649   :  { %4191 = vpow2.f32 %v2884_v55 }
 0x656   :  { %v4192_v56 = vpop.eup %4191 }
 0x657   :  { %v2886_v57 = vsel %vm2879_vm8, %v4192_v56, 0.0 }
 0x658   :  { %2887 = vadd.xlane.f32.xlu0 %v2886_v57 }
 0x6e1   :  { %v2888_v44 = vpop.xlane.xlu0 %2887 }
 0x6e2   :  { %4193 = vlog2.f32 %v2888_v44 }
 0x6ef   :  { %v4194_v58 = vpop.eup %4193 }
 0x6f0   :  { %v2890_v59 = vmul.f32 0.6931472, %v4194_v58 }
 0x6f2   :  { %v2891_v60 = vadd.f32 %v2890_v59, %v2882_v53 }
 0x6f4   :  { %v2892_v61 = vsub.f32 %v2876_v50, %v2891_v60 }
 0x6f6   :  { %2893 = vst.msk [vmem:[#allocation4] sm:$0x3] %vm2879_vm8, %v2892_v61 }
 0x6f7   :  { %4208 = shalt.err (!%p4205_p4)
}
 0x6f8   :  { %2903 = dma.vmem_to_hbm [thread:$0]  %s2901_s4, 32, %s5388_s10, [#allocation5]  }
 0x6f9   :  { %4217 = dma.done.wait [#allocation5], 32  }
 0x6fa   :  { %4218 = vsyncadd [#allocation5], 4294967264 }
 0x6fb   :  { %2907 = vsyncpa [#allocation5], 1 }

</bundles_post_ra>
